<compile_context>
chip_gen: v6e
topology: v6e:2x2x1
jax: 0.10.0
libtpu: 0.0.40
codegen_flags: <defaults>
</compile_context>

<pallas_src>
import jax
import jax.numpy as jnp
from jax.experimental import pallas as pl
from jax.experimental.pallas import tpu as pltpu

INPUT_SHAPE = (3, 28, 28)
INPUT_SIZE = INPUT_SHAPE[0] * INPUT_SHAPE[1] * INPUT_SHAPE[2]  # 2352
RESERVOIR_OUTPUT_LENGTH = 5000
NATURAL_SIZE = RESERVOIR_OUTPUT_LENGTH + INPUT_SIZE            # 7352
NUM_CLASSES = 2

SUBLANE = 8
TB_MAX = 256  # f32 x tile: 256*7352*4 B ~ 7.2 MiB; ~14.4 MiB double-buffered.


def _round_up(x, m):
    return -(-x // m) * m


def rnn_out_kernel(x_ref, w_ref, b_ref, o_ref):
    # x_ref: (TB, 7352) f32, w_ref: (7352, 2) bf16, b_ref: (1, 2) f32.
    xb = x_ref[...].astype(jnp.bfloat16)            # VPU cast, hidden under DMA
    z = jnp.dot(xb, w_ref[...], preferred_element_type=jnp.float32)
    z = z + b_ref[...]                              # (TB, 2) f32
    # 2-class softmax without max/div:
    #   softmax(z)_i = sigmoid(z_i - z_other) = sigmoid(2*z_i - (z_0 + z_1))
    s = jnp.sum(z, axis=-1, keepdims=True)          # (TB, 1)
    logit = 2.0 * z - s
    o_ref[...] = (1.0 / (1.0 + jnp.exp(-logit))).astype(o_ref.dtype)


def rnn_out_forward(x, w, b, *, tb_max=TB_MAX):
    """softmax(x @ w.T + b, axis=1) for x:(B,7352) f32, w:(2,7352), b:(2,)."""
    B, D = x.shape
    assert D == NATURAL_SIZE
    assert w.shape == (NUM_CLASSES, NATURAL_SIZE)
    assert b.shape == (NUM_CLASSES,)

    # Only the tiny weight/bias are massaged in the wrapper (~29 KB total);
    # the big x operand is streamed as-is.
    w_t = jnp.transpose(w).astype(jnp.bfloat16)     # (7352, 2)
    b_row = b.reshape(1, NUM_CLASSES).astype(jnp.float32)

    # Batch tile: multiple of the sublane count, capped for VMEM.
    tb = min(tb_max, _round_up(B, SUBLANE))
    grid = (pl.cdiv(B, tb),)

    return pl.pallas_call(
        rnn_out_kernel,
        out_shape=jax.ShapeDtypeStruct((B, NUM_CLASSES), jnp.float32),
        grid=grid,
        in_specs=[
            # x tiled over batch -> double-buffered HBM stream (f32, native).
            pl.BlockSpec((tb, D), lambda i: (i, 0)),
            # Weight / bias: constant block index -> fetched once, VMEM-resident.
            pl.BlockSpec((D, NUM_CLASSES), lambda i: (0, 0)),
            pl.BlockSpec((1, NUM_CLASSES), lambda i: (0, 0)),
        ],
        out_specs=pl.BlockSpec((tb, NUM_CLASSES), lambda i: (i, 0)),
        compiler_params=pltpu.CompilerParams(
            dimension_semantics=("parallel",),
            vmem_limit_bytes=32 * 1024 * 1024,
        ),
    )(x, w_t, b_row)


if __name__ == "__main__":
    key = jax.random.PRNGKey(0)
    k_x, k_w, k_b = jax.random.split(key, 3)

    B = 24  # small demo batch

    # Deterministic parameter init mimicking torch.nn.Linear's default
    # (uniform in [-1/sqrt(fan_in), 1/sqrt(fan_in)]).
    bound = 1.0 / (NATURAL_SIZE ** 0.5)
    w = jax.random.uniform(k_w, (NUM_CLASSES, NATURAL_SIZE),
                           minval=-bound, maxval=bound, dtype=jnp.float32)
    b = jax.random.uniform(k_b, (NUM_CLASSES,),
                           minval=-bound, maxval=bound, dtype=jnp.float32)
    x = jax.random.normal(k_x, (B, NATURAL_SIZE), dtype=jnp.float32)

    # Single-tile path (tb = 24, grid=(1,)).
    out = jax.block_until_ready(rnn_out_forward(x, w, b))
    # Multi-step path (tb = 8, grid=(3,)) to exercise the pipelined grid.
    out_tiled = jax.block_until_ready(rnn_out_forward(x, w, b, tb_max=8))

    assert out.shape == (B, NUM_CLASSES)
    assert jnp.allclose(out, out_tiled, atol=1e-6, rtol=1e-6)

    # Reference 1: same bf16-quantized operands, f32 math -> validates the
    # kernel mechanics (matmul, bias, softmax) tightly.
    x_bf = x.astype(jnp.bfloat16).astype(jnp.float32)
    w_bf = w.astype(jnp.bfloat16).astype(jnp.float32)
    ref_bf = jax.nn.softmax(x_bf @ w_bf.T + b[None, :], axis=1)
    assert jnp.allclose(out, ref_bf, atol=1e-4, rtol=1e-4)

    # Reference 2: full-f32 module semantics -> confirms the bf16 MXU path
    # stays within a tight tolerance of the PyTorch f32 forward.
    ref_f32 = jax.nn.softmax(x @ w.T + b[None, :], axis=1)
    assert jnp.allclose(out, ref_f32, atol=1e-2, rtol=1e-2)

    print("KERNEL_OK")
</pallas_src>

<mosaic_0001>
module attributes {stable_mosaic.version = 11 : i64} {
  func.func @rnn_out_kernel(%arg0: i32, %arg1: memref<24x7352xf32, #tpu.memory_space<vmem>>, %arg2: memref<7352x2xbf16, #tpu.memory_space<vmem>>, %arg3: memref<1x2xf32, #tpu.memory_space<vmem>>, %arg4: memref<24x2xf32, #tpu.memory_space<vmem>>) attributes {dimension_semantics = [#tpu.dimension_semantics<parallel>], iteration_bounds = array<i64: 1>, scalar_prefetch = 0 : i64, scratch_operands = 0 : i64, tpu.core_type = #tpu.core_type<tc>, window_params = [{transform_indices = @transform_0, window_bounds = array<i64: 24, 7352>}, {pipeline_mode = #tpu.pipeline_mode<synchronous>, transform_indices = @transform_1, window_bounds = array<i64: 7352, 2>}, {pipeline_mode = #tpu.pipeline_mode<synchronous>, transform_indices = @transform_2, window_bounds = array<i64: 1, 2>}, {transform_indices = @transform_3, window_bounds = array<i64: 24, 2>}]} {
    %c0 = arith.constant 0 : index
    %c0_0 = arith.constant 0 : index
    %0 = vector.load %arg1[%c0, %c0_0] : memref<24x7352xf32, #tpu.memory_space<vmem>>, vector<24x7352xf32>
    %1 = arith.truncf %0 : vector<24x7352xf32> to vector<24x7352xbf16>
    %c0_1 = arith.constant 0 : index
    %c0_2 = arith.constant 0 : index
    %2 = vector.load %arg2[%c0_1, %c0_2] : memref<7352x2xbf16, #tpu.memory_space<vmem>>, vector<7352x2xbf16>
    %cst = arith.constant dense<0.000000e+00> : vector<24x2xf32>
    %3 = tpu.matmul %1, %2, %cst {dimension_numbers = #tpu.dot_dimension_numbers<[1], [0], [0], [1], [0, 0, 1, 1], [], []>} : vector<24x7352xbf16>, vector<7352x2xbf16>, vector<24x2xf32> -> vector<24x2xf32>
    %c0_3 = arith.constant 0 : index
    %c0_4 = arith.constant 0 : index
    %4 = vector.load %arg3[%c0_3, %c0_4] : memref<1x2xf32, #tpu.memory_space<vmem>>, vector<1x2xf32>
    %5 = vector.broadcast %4 : vector<1x2xf32> to vector<24x2xf32>
    %6 = arith.addf %3, %5 : vector<24x2xf32>
    %cst_5 = arith.constant dense<0.000000e+00> : vector<24xf32>
    %7 = vector.multi_reduction <add>, %6, %cst_5 [1] : vector<24x2xf32> to vector<24xf32>
    %8 = vector.shape_cast %7 : vector<24xf32> to vector<24x1xf32>
    %cst_6 = arith.constant 2.000000e+00 : f32
    %9 = vector.broadcast %cst_6 : f32 to vector<24x2xf32>
    %10 = arith.mulf %9, %6 : vector<24x2xf32>
    %11 = vector.broadcast %8 : vector<24x1xf32> to vector<24x2xf32>
    %12 = arith.subf %10, %11 : vector<24x2xf32>
    %cst_7 = arith.constant 0.000000e+00 : f32
    %13 = vector.broadcast %cst_7 : f32 to vector<24x2xf32>
    %14 = arith.subf %13, %12 : vector<24x2xf32>
    %15 = math.exp %14 : vector<24x2xf32>
    %cst_8 = arith.constant 1.000000e+00 : f32
    %16 = vector.broadcast %cst_8 : f32 to vector<24x2xf32>
    %17 = arith.addf %16, %15 : vector<24x2xf32>
    %cst_9 = arith.constant 1.000000e+00 : f32
    %18 = vector.broadcast %cst_9 : f32 to vector<24x2xf32>
    %19 = arith.divf %18, %17 : vector<24x2xf32>
    %c0_10 = arith.constant 0 : index
    %c0_11 = arith.constant 0 : index
    %20 = vector.load %arg4[%c0_10, %c0_11] : memref<24x2xf32, #tpu.memory_space<vmem>>, vector<24x2xf32>
    tpu.vector_store %arg4[%c0_10, %c0_11], %19 {strides = array<i32>} : memref<24x2xf32, #tpu.memory_space<vmem>>, vector<24x2xf32>,
    return
  }
  func.func @transform_0(%arg0: i32) -> (i32, i32) {
    %c0_i32 = arith.constant 0 : i32
    %c0_i32_0 = arith.constant 0 : i32
    return %arg0, %c0_i32 : i32, i32
  }
  func.func @transform_1(%arg0: i32) -> (i32, i32) {
    %c0_i32 = arith.constant 0 : i32
    %c0_i32_0 = arith.constant 0 : i32
    %c0_i32_1 = arith.constant 0 : i32
    return %c0_i32, %c0_i32_0 : i32, i32
  }
  func.func @transform_2(%arg0: i32) -> (i32, i32) {
    %c0_i32 = arith.constant 0 : i32
    %c0_i32_0 = arith.constant 0 : i32
    %c0_i32_1 = arith.constant 0 : i32
    return %c0_i32, %c0_i32_0 : i32, i32
  }
  func.func @transform_3(%arg0: i32) -> (i32, i32) {
    %c0_i32 = arith.constant 0 : i32
    %c0_i32_0 = arith.constant 0 : i32
    return %arg0, %c0_i32 : i32, i32
  }
}

</mosaic_0001>

<bundles_post_ra>
// kernel: tpu_custom_call.1
= control target key start
LH: loop header
LB: loop body
LE: loop exit
PB: predicated region body
PF: predicated region fallthrough
CT: control target
= control target key end

     0   :  { %vm3995_vm0 = vcmask 1043456   ;;  %vm3988_vm1 = vcmask 457728   ;;  %vm5391_vm2 = vcmask 15360   ;;  %s9206_s1 = inlined_call_operand.vmem [shape: bf16[7352,2], index: 1, kind: input, shape index: {}]   ;;  %s9207_s0 = inlined_call_operand.vmem [shape: f32[24,7352], index: 0, kind: input, shape index: {}]   ;;  %s9208_s2 = inlined_call_operand.vmem [shape: f32[1,2], index: 2, kind: input, shape index: {}]   ;;  %s9209_s3 = inlined_call_operand.vmem [shape: f32[24,2], index: 3, kind: output, shape index: {}]  }
   0x1   :  { %v6680_v0 = vld [vmem:[%s9206_s1 + $0x78] sm:$0xff]   ;;  %v6682_v2 = vld [vmem:[%s9206_s1 + $0x70] sm:$0xff]   ;;  %v6684_v4 = vld [vmem:[%s9206_s1 + $0x68] sm:$0xff]  }
   0x2   :  { %v6681_v1 = vld [vmem:[%s9206_s1 + $0x38] sm:$0xff]   ;;  %5895 = vmatprep.subr.bf16.mxu1 %v6680_v0  ;;  %v6683_v3 = vld [vmem:[%s9206_s1 + $0x30] sm:$0xff]   ;;  %v6685_v5 = vld [vmem:[%s9206_s1 + $0x28] sm:$0xff]  }
   0x3   :  { %5896 = vmatpush3.bf16.msra.mxu1 %v6681_v1  ;;  %v6686_v6 = vld [vmem:[%s9206_s1 + $0x60] sm:$0xff]   ;;  %v6689_v7 = vld [vmem:[%s9206_s1 + $0x178] sm:$0xff]   ;;  %v6693_v11 = vld [vmem:[%s9206_s1 + $0x170] sm:$0xff]  }
   0x4   :  { %5897 = vmatprep.subr.bf16.mxu1 %v6682_v2  ;;  %v6687_v8 = vld [vmem:[%s9206_s1 + $0x20] sm:$0xff]   ;;  %5951 = vmatprep.subr.bf16.mxu0 %v6689_v7  ;;  %v6691_v9 = vld [vmem:[%s9206_s1 + $0x138] sm:$0xff]   ;;  %v6695_v13 = vld [vmem:[%s9206_s1 + $0x130] sm:$0xff]  }
   0x5   :  { %v6688_v10 = vld [vmem:[%s9206_s1 + $0x58] sm:$0xff]   ;;  %5952 = vmatpush3.bf16.msra.mxu0 %v6691_v9  ;;  %v6692_v14 = vld [vmem:[%s9206_s1 + $0x50] sm:$0xff]   ;;  %v6697_v15 = vld [vmem:[%s9206_s1 + $0x168] sm:$0xff]  }
   0x6   :  { %v6690_v12 = vld [vmem:[%s9206_s1 + $0x18] sm:$0xff]   ;;  %5953 = vmatprep.subr.bf16.mxu0 %v6693_v11  ;;  %v6694_v16 = vld [vmem:[%s9206_s1 + $0x10] sm:$0xff]   ;;  %v6699_v17 = vld [vmem:[%s9206_s1 + $0x128] sm:$0xff]  }
   0x7   :  { %5898 = vmatpush3.bf16.msra.mxu1 %v6683_v3  ;;  %v6696_v18 = vld [vmem:[%s9206_s1 + $0x48] sm:$0xff]   ;;  %v6701_v19 = vld [vmem:[%s9206_s1 + $0x160] sm:$0xff]   ;;  %v74_v24 = vld [vmem:[%s9207_s0 + $0x1d8] sm:$0xff] }
   0x8   :  { %5899 = vmatprep.subr.bf16.mxu1 %v6684_v4  ;;  %v6698_v20 = vld [vmem:[%s9206_s1 + $0x8] sm:$0xff]   ;;  %v6703_v21 = vld [vmem:[%s9206_s1 + $0x120] sm:$0xff]   ;;  %v73_v28 = vld [vmem:[%s9207_s0 + $0x1d0] sm:$0xff] }
   0x9   :  { %5954 = vmatpush3.bf16.msra.mxu0 %v6695_v13  ;;  %v6700_v22 = vld [vmem:[%s9206_s1 + $0x40] sm:$0xff]   ;;  %v16_v23 = vld [vmem:[%s9207_s0 + $0x8] sm:$0xff]  ;;  %v6705_v29 = vld [vmem:[%s9206_s1 + $0x158] sm:$0xff]  }
   0xa   :  { %5955 = vmatprep.subr.bf16.mxu0 %v6697_v15  ;;  %v6702_v25 = vld [vmem:[%s9206_s1] sm:$0xff]   ;;  %v190_v26 = vpack.c.bf16 %v74_v24, %v16_v23  ;;  %v6704_v30 = vld [vmem:[%s9206_s1 + $0xf8] sm:$0xff]   ;;  %v6709_v34 = vld [vmem:[%s9206_s1 + $0x150] sm:$0xff]  }
   0xb   :  { %5900 = vmatpush3.bf16.msra.mxu1 %v6685_v5  ;;  %v15_v27 = vld [vmem:[%s9207_s0] sm:$0xff]  ;;  %v6707_v31 = vld [vmem:[%s9206_s1 + $0x118] sm:$0xff]   ;;  %v6708_v35 = vld [vmem:[%s9206_s1 + $0xf0] sm:$0xff]  }
   0xc   :  { %5901 = vmatprep.subr.bf16.mxu1 %v6686_v6  ;;  %4031 = vmatprep.mubr.bf16.mxu1 %v190_v26  ;;  %v189_v32 = vpack.c.bf16 %v73_v28, %v15_v27  ;;  %v6706_v33 = vld [vmem:[%s9206_s1 + $0xb8] sm:$0xff]   ;;  %v6711_v36 = vld [vmem:[%s9206_s1 + $0x110] sm:$0xff]   ;;  %v6713_v38 = vld [vmem:[%s9206_s1 + $0x148] sm:$0xff]  }
   0xd   :  { %5956 = vmatpush3.bf16.msra.mxu0 %v6699_v17  ;;  %v6710_v37 = vld [vmem:[%s9206_s1 + $0xb0] sm:$0xff]   ;;  %v6712_v39 = vld [vmem:[%s9206_s1 + $0xe8] sm:$0xff]   ;;  %v6717_v42 = vld [vmem:[%s9206_s1 + $0x140] sm:$0xff]  }
   0xe   :  { %5957 = vmatprep.subr.bf16.mxu0 %v6701_v19  ;;  %v6715_v40 = vld [vmem:[%s9206_s1 + $0x108] sm:$0xff]   ;;  %v6716_v43 = vld [vmem:[%s9206_s1 + $0xe0] sm:$0xff]   ;;  %v78_v47 = vld [vmem:[%s9207_s0 + $0x1f8] sm:$0xff] }
   0xf   :  { %5902 = vmatpush3.bf16.msra.mxu1 %v6687_v8  ;;  %v6714_v41 = vld [vmem:[%s9206_s1 + $0xa8] sm:$0xff]   ;;  %v6719_v44 = vld [vmem:[%s9206_s1 + $0x100] sm:$0xff]   ;;  %v6721_v49 = vld [vmem:[%s9206_s1 + $0x278] sm:$0xff]  }
  0x10   :  { %5903 = vmatprep.subr.bf16.mxu1 %v6688_v10  ;;  %v6718_v45 = vld [vmem:[%s9206_s1 + $0xa0] sm:$0xff]   ;;  %v20_v46 = vld [vmem:[%s9207_s0 + $0x28] sm:$0xff]  ;;  %v6720_v50 = vld [vmem:[%s9206_s1 + $0xd8] sm:$0xff]  }
  0x11   :  { %5958 = vmatpush3.bf16.msra.mxu0 %v6703_v21  ;;  %v194_v48 = vpack.c.bf16 %v78_v47, %v20_v46  ;;  %v6722_v51 = vld [vmem:[%s9206_s1 + $0x98] sm:$0xff]   ;;  %v19_v52 = vld [vmem:[%s9207_s0 + $0x20] sm:$0xff]  ;;  %v77_v53 = vld [vmem:[%s9207_s0 + $0x1f0] sm:$0xff] }
  0x12   :  { %5959 = vmatprep.subr.bf16.mxu0 %v6705_v29  ;;  %v193_v54 = vpack.c.bf16 %v77_v53, %v19_v52  ;;  %v6723_v55 = vld [vmem:[%s9206_s1 + $0x238] sm:$0xff]   ;;  %v132_v56 = vld [vmem:[%s9207_s0 + $0x3a8] sm:$0xff]  ;;  %v131_v58 = vld [vmem:[%s9207_s0 + $0x3a0] sm:$0xff] }
  0x13   :  { %5904 = vmatpush3.bf16.msra.mxu1 %v6690_v12  ;;  %4127 = vmatprep.mubr.bf16.mxu0 %v194_v48  ;;  %v248_v57 = vpack.c.bf16 %v132_v56, %v132_v56  ;;  %v247_v59 = vpack.c.bf16 %v131_v58, %v131_v58  ;;  %v6724_v60 = vld [vmem:[%s9206_s1 + $0xd0] sm:$0xff]   ;;  %v6728_v0 = vld [vmem:[%s9206_s1 + $0xc8] sm:$0xff]   ;;  %v6732_v4 = vld [vmem:[%s9206_s1 + $0xc0] sm:$0xff]  }
  0x14   :  { %5905 = vmatprep.subr.bf16.mxu1 %v6692_v14  ;;  %v6725_v61 = vld [vmem:[%s9206_s1 + $0x270] sm:$0xff]   ;;  %v6729_v1 = vld [vmem:[%s9206_s1 + $0x268] sm:$0xff]   ;;  %v6733_v5 = vld [vmem:[%s9206_s1 + $0x260] sm:$0xff]  }
  0x15   :  { %5960 = vmatpush3.bf16.msra.mxu0 %v6707_v31  ;;  %v6726_v62 = vld [vmem:[%s9206_s1 + $0x90] sm:$0xff]   ;;  %v6730_v2 = vld [vmem:[%s9206_s1 + $0x88] sm:$0xff]   ;;  %v6734_v6 = vld [vmem:[%s9206_s1 + $0x80] sm:$0xff]  }
  0x16   :  { %5961 = vmatprep.subr.bf16.mxu0 %v6709_v34  ;;  %v6727_v63 = vld [vmem:[%s9206_s1 + $0x230] sm:$0xff]   ;;  %v6731_v3 = vld [vmem:[%s9206_s1 + $0x228] sm:$0xff]   ;;  %v6735_v7 = vld [vmem:[%s9206_s1 + $0x220] sm:$0xff]  }
  0x17   :  { %5906 = vmatpush3.bf16.msra.mxu1 %v6694_v16  ;;  %v18_v8 = vld [vmem:[%s9207_s0 + $0x18] sm:$0xff]  ;;  %v76_v9 = vld [vmem:[%s9207_s0 + $0x1e8] sm:$0xff]  ;;  %v17_v11 = vld [vmem:[%s9207_s0 + $0x10] sm:$0xff] }
  0x18   :  { %5907 = vmatprep.subr.bf16.mxu1 %v6696_v18  ;;  %v192_v10 = vpack.c.bf16 %v76_v9, %v18_v8  ;;  %v75_v12 = vld [vmem:[%s9207_s0 + $0x1e0] sm:$0xff]  ;;  %v6736_v13 = vld [vmem:[%s9206_s1 + $0x1f8] sm:$0xff]   ;;  %v6740_v18 = vld [vmem:[%s9206_s1 + $0x1f0] sm:$0xff]  }
  0x19   :  { %5962 = vmatpush3.bf16.msra.mxu0 %v6711_v36  ;;  %v191_v14 = vpack.c.bf16 %v75_v12, %v17_v11  ;;  %v6737_v15 = vld [vmem:[%s9206_s1 + $0x258] sm:$0xff]   ;;  %v6741_v19 = vld [vmem:[%s9206_s1 + $0x250] sm:$0xff]   ;;  %v6744_v28 = vld [vmem:[%s9206_s1 + $0x1e8] sm:$0xff]  }
  0x1a   :  { %5963 = vmatprep.subr.bf16.mxu0 %v6713_v38  ;;  %v6738_v16 = vld [vmem:[%s9206_s1 + $0x1b8] sm:$0xff]   ;;  %v6743_v21 = vld [vmem:[%s9206_s1 + $0x210] sm:$0xff]   ;;  %v6745_v29 = vld [vmem:[%s9206_s1 + $0x248] sm:$0xff]  }
  0x1b   :  { %5908 = vmatpush3.bf16.msra.mxu1 %v6698_v20  ;;  %v6739_v17 = vld [vmem:[%s9206_s1 + $0x218] sm:$0xff]   ;;  %v6742_v20 = vld [vmem:[%s9206_s1 + $0x1b0] sm:$0xff]   ;;  %v6748_v34 = vld [vmem:[%s9206_s1 + $0x1e0] sm:$0xff]  }
  0x1c   :  { %5909 = vmatprep.subr.bf16.mxu1 %v6700_v22  ;;  %v134_v22 = vld [vmem:[%s9207_s0 + $0x3b8] sm:$0xff]  ;;  %v133_v24 = vld [vmem:[%s9207_s0 + $0x3b0] sm:$0xff]  ;;  %v6750_v36 = vld [vmem:[%s9206_s1 + $0x1a0] sm:$0xff]  }
  0x1d   :  { %5964 = vmatpush3.bf16.msra.mxu0 %v6715_v40  ;;  %v250_v23 = vpack.c.bf16 %v134_v22, %v134_v22  ;;  %v249_v26 = vpack.c.bf16 %v133_v24, %v133_v24  ;;  %v6752_v38 = vld [vmem:[%s9206_s1 + $0x1d8] sm:$0xff]   ;;  %v6756_v48 = vld [vmem:[%s9206_s1 + $0x1d0] sm:$0xff]   ;;  %v6760_v52 = vld [vmem:[%s9206_s1 + $0x1c8] sm:$0xff]  }
  0x1e   :  { %5965 = vmatprep.subr.bf16.mxu0 %v6717_v42  ;;  %v82_v40 = vld [vmem:[%s9207_s0 + $0x218] sm:$0xff]  ;;  %v6761_v53 = vld [vmem:[%s9206_s1 + $0x368] sm:$0xff]   ;;  %v6764_v56 = vld [vmem:[%s9206_s1 + $0x1c0] sm:$0xff]  }
  0x1f   :  { %5910 = vmatpush3.bf16.msra.mxu1 %v6702_v25  ;;  %v136_v25 = vld [vmem:[%s9207_s0 + $0x3c8] sm:$0xff]  ;;  %v6753_v42 = vld [vmem:[%s9206_s1 + $0x378] sm:$0xff]   ;;  %v6766_v58 = vld [vmem:[%s9206_s1 + $0x180] sm:$0xff]  }
  0x20   :  { %5923 = vmatprep.subr.bf16.mxu1 %v6704_v30  ;;  %v252_v27 = vpack.c.bf16 %v136_v25, %v136_v25  ;;  %v135_v30 = vld [vmem:[%s9207_s0 + $0x3c0] sm:$0xff]  ;;  %v6755_v47 = vld [vmem:[%s9206_s1 + $0x338] sm:$0xff]   ;;  %v6774_v8 = vld [vmem:[%s9206_s1 + $0x2b0] sm:$0xff]  }
  0x21   :  { %5966 = vmatpush3.bf16.msra.mxu0 %v6719_v44  ;;  %v251_v31 = vpack.c.bf16 %v135_v30, %v135_v30  ;;  %v23_v44 = vld [vmem:[%s9207_s0 + $0x40] sm:$0xff]  ;;  %v6775_v9 = vld [vmem:[%s9206_s1 + $0x310] sm:$0xff]   ;;  %v6785_v30 = vld [vmem:[%s9206_s1 + $0x478] sm:$0xff]  }
  0x22   :  { %4032 = vmatmul.mubr.bf16.vlgmr.msra.gmra.mxu1 %v189_v32  ;;  %6007 = vmatprep.subr.bf16.mxu0 %v6721_v49  ;;  %v6746_v32 = vld [vmem:[%s9206_s1 + $0x1a8] sm:$0xff]   ;;  %v6757_v49 = vld [vmem:[%s9206_s1 + $0x370] sm:$0xff]   ;;  %v6780_v22 = vld [vmem:[%s9206_s1 + $0x2e0] sm:$0xff]  }
  0x23   :  { %5924 = vmatpush3.bf16.msra.mxu1 %v6706_v33  ;;  %4039 = vmatprep.mubr.bf16.mxu1 %v248_v57  ;;  %v6747_v33 = vld [vmem:[%s9206_s1 + $0x208] sm:$0xff]   ;;  %v6765_v57 = vld [vmem:[%s9206_s1 + $0x360] sm:$0xff]   ;;  %v137_v12 = vld [vmem:[%s9207_s0 + $0x3d0] sm:$0xff] }
  0x24   :  { %5925 = vmatprep.subr.bf16.mxu1 %v6708_v35  ;;  %4128 = vmatmul.mubr.bf16.vlgmr.msra.gmra.mxu0 %v193_v54  ;;  %v6749_v35 = vld [vmem:[%s9206_s1 + $0x240] sm:$0xff]   ;;  %v6762_v54 = vld [vmem:[%s9206_s1 + $0x188] sm:$0xff]  }
  0x25   :  { %6008 = vmatpush3.bf16.msra.mxu0 %v6723_v55  ;;  %4135 = vmatprep.mubr.bf16.mxu0 %v252_v27  ;;  %v6763_v55 = vld [vmem:[%s9206_s1 + $0x328] sm:$0xff]   ;;  %v6782_v24 = vld [vmem:[%s9206_s1 + $0x2a0] sm:$0xff]  }
  0x26   :  { %6009 = vmatprep.subr.bf16.mxu0 %v6725_v61  ;;  %v80_v61 = vld [vmem:[%s9207_s0 + $0x208] sm:$0xff]  ;;  %v6783_v25 = vld [vmem:[%s9206_s1 + $0x300] sm:$0xff]  }
  0x27   :  { %5926 = vmatpush3.bf16.msra.mxu1 %v6710_v37  ;;  %v6751_v37 = vld [vmem:[%s9206_s1 + $0x200] sm:$0xff]   ;;  %v28_v27 = vld [vmem:[%s9207_s0 + $0x68] sm:$0xff] }
  0x28   :  { %5927 = vmatprep.subr.bf16.mxu1 %v6712_v39  ;;  %v24_v39 = vld [vmem:[%s9207_s0 + $0x48] sm:$0xff] }
  0x29   :  { %6010 = vmatpush3.bf16.msra.mxu0 %v6727_v63  ;;  %v21_v63 = vld [vmem:[%s9207_s0 + $0x30] sm:$0xff] }
  0x2a   :  { %4040 = vmatmul.mubr.bf16.gmra.mxu1 %v247_v59  ;;  %6011 = vmatprep.subr.bf16.mxu0 %v6729_v1  ;;  %v6767_v59 = vld [vmem:[%s9206_s1 + $0x320] sm:$0xff]  }
  0x2b   :  { %5928 = vmatpush3.bf16.msra.mxu1 %v6714_v41  ;;  %4079 = vmatprep.mubr.bf16.mxu1 %v192_v10  ;;  %v198_v41 = vpack.c.bf16 %v82_v40, %v24_v39  ;;  %v138_v10 = vld [vmem:[%s9207_s0 + $0x3d8] sm:$0xff]  ;;  %v6791_v39 = vld [vmem:[%s9206_s1 + $0x430] sm:$0xff]   ;;  %v6792_v40 = vld [vmem:[%s9206_s1 + $0x2c8] sm:$0xff]  }
  0x2c   :  { %5929 = vmatprep.subr.bf16.mxu1 %v6716_v43  ;;  %4136 = vmatmul.mubr.bf16.gmra.mxu0 %v251_v31  ;;  %v6754_v43 = vld [vmem:[%s9206_s1 + $0x198] sm:$0xff]   ;;  %v254_v11 = vpack.c.bf16 %v138_v10, %v138_v10  ;;  %v6812_v10 = vld [vmem:[%s9206_s1 + $0x3e0] sm:$0xff]  }
  0x2d   :  { %6012 = vmatpush3.bf16.msra.mxu0 %v6731_v3  ;;  %4223 = vmatprep.mubr.bf16.mxu0 %v198_v41  ;;  %v6769_v3 = vld [vmem:[%s9206_s1 + $0x358] sm:$0xff]   ;;  %v6793_v41 = vld [vmem:[%s9206_s1 + $0x468] sm:$0xff]  }
  0x2e   :  { %6013 = vmatprep.subr.bf16.mxu0 %v6733_v5  ;;  %v6771_v5 = vld [vmem:[%s9206_s1 + $0x318] sm:$0xff]  }
  0x2f   :  { %5930 = vmatpush3.bf16.msra.mxu1 %v6718_v45  ;;  %v81_v45 = vld [vmem:[%s9207_s0 + $0x210] sm:$0xff]  ;;  %v6786_v31 = vld [vmem:[%s9206_s1 + $0x298] sm:$0xff]  }
  0x30   :  { %5931 = vmatprep.subr.bf16.mxu1 %v6720_v50  ;;  %v197_v46 = vpack.c.bf16 %v81_v45, %v23_v44  ;;  %v6758_v50 = vld [vmem:[%s9206_s1 + $0x190] sm:$0xff]   ;;  %v6796_v44 = vld [vmem:[%s9206_s1 + $0x2c0] sm:$0xff]  }
  0x31   :  { %6014 = vmatpush3.bf16.msra.mxu0 %v6735_v7  ;;  %v6773_v7 = vld [vmem:[%s9206_s1 + $0x350] sm:$0xff]   ;;  %v6797_v45 = vld [vmem:[%s9206_s1 + $0x460] sm:$0xff]  }
  0x32   :  { %6015 = vmatprep.subr.bf16.mxu0 %v6737_v15 }
  0x33   :  { %5932 = vmatpush3.bf16.msra.mxu1 %v6722_v51  ;;  %v6759_v51 = vld [vmem:[%s9206_s1 + $0x330] sm:$0xff]  }
  0x34   :  { %5933 = vmatprep.subr.bf16.mxu1 %v6724_v60  ;;  %v22_v60 = vld [vmem:[%s9207_s0 + $0x38] sm:$0xff] }
  0x35   :  { %6016 = vmatpush3.bf16.msra.mxu0 %v6739_v17  ;;  %v6777_v17 = vld [vmem:[%s9206_s1 + $0x348] sm:$0xff]  }
  0x36   :  { %6017 = vmatprep.subr.bf16.mxu0 %v6741_v19 }
  0x37   :  { %5934 = vmatpush3.bf16.msra.mxu1 %v6726_v62  ;;  %v196_v62 = vpack.c.bf16 %v80_v61, %v22_v60  ;;  %v6806_v60 = vld [vmem:[%s9206_s1 + $0x3b0] sm:$0xff]  }
  0x38   :  { %5935 = vmatprep.subr.bf16.mxu1 %v6728_v0  ;;  %v79_v0 = vld [vmem:[%s9207_s0 + $0x200] sm:$0xff]  ;;  %v6807_v61 = vld [vmem:[%s9206_s1 + $0x410] sm:$0xff]  }
  0x39   :  { %6018 = vmatpush3.bf16.msra.mxu0 %v6743_v21  ;;  %v195_v1 = vpack.c.bf16 %v79_v0, %v21_v63  ;;  %v6779_v21 = vld [vmem:[%s9206_s1 + $0x308] sm:$0xff]   ;;  %v141_v0 = vld [vmem:[%s9207_s0 + $0x3f0] sm:$0xff] }
  0x3a   :  { %6019 = vmatprep.subr.bf16.mxu0 %v6745_v29 }
  0x3b   :  { %5936 = vmatpush3.bf16.msra.mxu1 %v6730_v2  ;;  %v6768_v2 = vld [vmem:[%s9206_s1 + $0x2f8] sm:$0xff]  }
  0x3c   :  { %5937 = vmatprep.subr.bf16.mxu1 %v6732_v4  ;;  %v6770_v4 = vld [vmem:[%s9206_s1 + $0x2b8] sm:$0xff]  }
  0x3d   :  { %6020 = vmatpush3.bf16.msra.mxu0 %v6747_v33  ;;  %v85_v33 = vld [vmem:[%s9207_s0 + $0x230] sm:$0xff] }
  0x3e   :  { %6021 = vmatprep.subr.bf16.mxu0 %v6749_v35  ;;  %v6787_v35 = vld [vmem:[%s9206_s1 + $0x438] sm:$0xff]  }
  0x3f   :  { %5938 = vmatpush3.bf16.msra.mxu1 %v6734_v6  ;;  %v6772_v6 = vld [vmem:[%s9206_s1 + $0x2f0] sm:$0xff]  }
  0x40   :  { %5979 = vmatprep.subr.bf16.mxu1 %v6736_v13  ;;  %v140_v13 = vld [vmem:[%s9207_s0 + $0x3e8] sm:$0xff] }
  0x41   :  { %6022 = vmatpush3.bf16.msra.mxu0 %v6751_v37  ;;  %v256_v15 = vpack.c.bf16 %v140_v13, %v140_v13  ;;  %v6789_v37 = vld [vmem:[%s9206_s1 + $0x470] sm:$0xff]   ;;  %v6815_v13 = vld [vmem:[%s9206_s1 + $0x400] sm:$0xff]  }
  0x42   :  { %4080 = vmatmul.mubr.bf16.vlgmr.msra.gmra.mxu1 %v191_v14  ;;  %6063 = vmatprep.subr.bf16.mxu0 %v6753_v42  ;;  %v253_v14 = vpack.c.bf16 %v137_v12, %v137_v12  ;;  %v6794_v42 = vld [vmem:[%s9206_s1 + $0x288] sm:$0xff]   ;;  %v6814_v12 = vld [vmem:[%s9206_s1 + $0x3a0] sm:$0xff]  }
  0x43   :  { %5980 = vmatpush3.bf16.msra.mxu1 %v6738_v16  ;;  %4087 = vmatprep.mubr.bf16.mxu1 %v250_v23  ;;  %v6776_v16 = vld [vmem:[%s9206_s1 + $0x2e8] sm:$0xff]   ;;  %v6781_v23 = vld [vmem:[%s9206_s1 + $0x340] sm:$0xff]  }
  0x44   :  { %5981 = vmatprep.subr.bf16.mxu1 %v6740_v18  ;;  %4224 = vmatmul.mubr.bf16.vlgmr.msra.gmra.mxu0 %v197_v46  ;;  %v139_v18 = vld [vmem:[%s9207_s0 + $0x3e0] sm:$0xff] }
  0x45   :  { %6064 = vmatpush3.bf16.msra.mxu0 %v6755_v47  ;;  %4231 = vmatprep.mubr.bf16.mxu0 %v256_v15  ;;  %v255_v19 = vpack.c.bf16 %v139_v18, %v139_v18  ;;  %v6798_v46 = vld [vmem:[%s9206_s1 + $0x280] sm:$0xff]   ;;  %v32_v15 = vld [vmem:[%s9207_s0 + $0x88] sm:$0xff]  ;;  %v6817_v18 = vld [vmem:[%s9206_s1 + $0x578] sm:$0xff]  }
  0x46   :  { %6065 = vmatprep.subr.bf16.mxu0 %v6757_v49  ;;  %v6799_v47 = vld [vmem:[%s9206_s1 + $0x420] sm:$0xff]   ;;  %v84_v49 = vld [vmem:[%s9207_s0 + $0x228] sm:$0xff] }
  0x47   :  { %5982 = vmatpush3.bf16.msra.mxu1 %v6742_v20  ;;  %v6778_v20 = vld [vmem:[%s9206_s1 + $0x2a8] sm:$0xff]  }
  0x48   :  { %5983 = vmatprep.subr.bf16.mxu1 %v6744_v28  ;;  %v86_v28 = vld [vmem:[%s9207_s0 + $0x238] sm:$0xff] }
  0x49   :  { %6066 = vmatpush3.bf16.msra.mxu0 %v6759_v51  ;;  %v202_v29 = vpack.c.bf16 %v86_v28, %v28_v27  ;;  %v25_v51 = vld [vmem:[%s9207_s0 + $0x50] sm:$0xff]  ;;  %v6824_v28 = vld [vmem:[%s9206_s1 + $0x3c8] sm:$0xff]  }
  0x4a   :  { %4088 = vmatmul.mubr.bf16.gmra.mxu1 %v249_v26  ;;  %6067 = vmatprep.subr.bf16.mxu0 %v6761_v53  ;;  %v6784_v26 = vld [vmem:[%s9206_s1 + $0x2d8] sm:$0xff]   ;;  %v6823_v27 = vld [vmem:[%s9206_s1 + $0x530] sm:$0xff]  }
  0x4b   :  { %5984 = vmatpush3.bf16.msra.mxu1 %v6746_v32  ;;  %4175 = vmatprep.mubr.bf16.mxu1 %v196_v62  ;;  %v27_v32 = vld [vmem:[%s9207_s0 + $0x60] sm:$0xff]  ;;  %v142_v62 = vld [vmem:[%s9207_s0 + $0x3f8] sm:$0xff] }
  0x4c   :  { %5985 = vmatprep.subr.bf16.mxu1 %v6748_v34  ;;  %4232 = vmatmul.mubr.bf16.gmra.mxu0 %v255_v19  ;;  %v201_v34 = vpack.c.bf16 %v85_v33, %v27_v32  ;;  %v258_v63 = vpack.c.bf16 %v142_v62, %v142_v62  ;;  %v6818_v19 = vld [vmem:[%s9206_s1 + $0x398] sm:$0xff]   ;;  %v6828_v32 = vld [vmem:[%s9206_s1 + $0x3c0] sm:$0xff]  }
  0x4d   :  { %6068 = vmatpush3.bf16.msra.mxu0 %v6763_v55  ;;  %4319 = vmatprep.mubr.bf16.mxu0 %v202_v29  ;;  %v6801_v55 = vld [vmem:[%s9206_s1 + $0x458] sm:$0xff]   ;;  %v6825_v29 = vld [vmem:[%s9206_s1 + $0x568] sm:$0xff]   ;;  %v6829_v33 = vld [vmem:[%s9206_s1 + $0x560] sm:$0xff]  }
  0x4e   :  { %6069 = vmatprep.subr.bf16.mxu0 %v6765_v57  ;;  %v6803_v57 = vld [vmem:[%s9206_s1 + $0x418] sm:$0xff]   ;;  %v6844_v62 = vld [vmem:[%s9206_s1 + $0x4e0] sm:$0xff]  }
  0x4f   :  { %5986 = vmatpush3.bf16.msra.mxu1 %v6750_v36  ;;  %v6788_v36 = vld [vmem:[%s9206_s1 + $0x2d0] sm:$0xff]  }
  0x50   :  { %5987 = vmatprep.subr.bf16.mxu1 %v6752_v38  ;;  %v6790_v38 = vld [vmem:[%s9206_s1 + $0x290] sm:$0xff]  }
  0x51   :  { %6070 = vmatpush3.bf16.msra.mxu0 %v6767_v59  ;;  %v6805_v59 = vld [vmem:[%s9206_s1 + $0x450] sm:$0xff]  }
  0x52   :  { %6071 = vmatprep.subr.bf16.mxu0 %v6769_v3 }
  0x53   :  { %5988 = vmatpush3.bf16.msra.mxu1 %v6754_v43  ;;  %v6795_v43 = vld [vmem:[%s9206_s1 + $0x428] sm:$0xff]  }
  0x54   :  { %5989 = vmatprep.subr.bf16.mxu1 %v6756_v48  ;;  %v26_v48 = vld [vmem:[%s9207_s0 + $0x58] sm:$0xff] }
  0x55   :  { %6072 = vmatpush3.bf16.msra.mxu0 %v6771_v5  ;;  %v6809_v5 = vld [vmem:[%s9206_s1 + $0x448] sm:$0xff]  }
  0x56   :  { %6073 = vmatprep.subr.bf16.mxu0 %v6773_v7 }
  0x57   :  { %5990 = vmatpush3.bf16.msra.mxu1 %v6758_v50  ;;  %v200_v50 = vpack.c.bf16 %v84_v49, %v26_v48  ;;  %v6838_v48 = vld [vmem:[%s9206_s1 + $0x4b0] sm:$0xff]  }
  0x58   :  { %5991 = vmatprep.subr.bf16.mxu1 %v6760_v52  ;;  %v83_v52 = vld [vmem:[%s9207_s0 + $0x220] sm:$0xff]  ;;  %v6839_v49 = vld [vmem:[%s9206_s1 + $0x510] sm:$0xff]  }
  0x59   :  { %6074 = vmatpush3.bf16.msra.mxu0 %v6775_v9  ;;  %v199_v53 = vpack.c.bf16 %v83_v52, %v25_v51  ;;  %v6811_v9 = vld [vmem:[%s9206_s1 + $0x408] sm:$0xff]   ;;  %v145_v52 = vld [vmem:[%s9207_s0 + $0x410] sm:$0xff] }
  0x5a   :  { %6075 = vmatprep.subr.bf16.mxu0 %v6777_v17 }
  0x5b   :  { %5992 = vmatpush3.bf16.msra.mxu1 %v6762_v54  ;;  %v6800_v54 = vld [vmem:[%s9206_s1 + $0x3f8] sm:$0xff]  }
  0x5c   :  { %5993 = vmatprep.subr.bf16.mxu1 %v6764_v56  ;;  %v6802_v56 = vld [vmem:[%s9206_s1 + $0x3b8] sm:$0xff]  }
  0x5d   :  { %6076 = vmatpush3.bf16.msra.mxu0 %v6779_v21  ;;  %v89_v21 = vld [vmem:[%s9207_s0 + $0x250] sm:$0xff] }
  0x5e   :  { %6077 = vmatprep.subr.bf16.mxu0 %v6781_v23  ;;  %v6819_v23 = vld [vmem:[%s9206_s1 + $0x538] sm:$0xff]  }
  0x5f   :  { %5994 = vmatpush3.bf16.msra.mxu1 %v6766_v58  ;;  %v6804_v58 = vld [vmem:[%s9206_s1 + $0x3f0] sm:$0xff]  }
  0x60   :  { %6035 = vmatprep.subr.bf16.mxu1 %v6768_v2  ;;  %v257_v2 = vpack.c.bf16 %v141_v0, %v141_v0  ;;  %v6846_v0 = vld [vmem:[%s9206_s1 + $0x4a0] sm:$0xff]  }
  0x61   :  { %6078 = vmatpush3.bf16.msra.mxu0 %v6783_v25  ;;  %v6821_v25 = vld [vmem:[%s9206_s1 + $0x570] sm:$0xff]  }
  0x62   :  { %4176 = vmatmul.mubr.bf16.vlgmr.msra.gmra.mxu1 %v195_v1  ;;  %6119 = vmatprep.subr.bf16.mxu0 %v6785_v30  ;;  %v144_v1 = vld [vmem:[%s9207_s0 + $0x408] sm:$0xff] }
  0x63   :  { %6036 = vmatpush3.bf16.msra.mxu1 %v6770_v4  ;;  %4183 = vmatprep.mubr.bf16.mxu1 %v254_v11  ;;  %v260_v3 = vpack.c.bf16 %v144_v1, %v144_v1  ;;  %v6808_v4 = vld [vmem:[%s9206_s1 + $0x3e8] sm:$0xff]   ;;  %v6813_v11 = vld [vmem:[%s9206_s1 + $0x440] sm:$0xff]  }
  0x64   :  { %6037 = vmatprep.subr.bf16.mxu1 %v6772_v6  ;;  %4320 = vmatmul.mubr.bf16.vlgmr.msra.gmra.mxu0 %v201_v34  ;;  %v143_v6 = vld [vmem:[%s9207_s0 + $0x400] sm:$0xff]  ;;  %v6826_v30 = vld [vmem:[%s9206_s1 + $0x388] sm:$0xff]  }
  0x65   :  { %6120 = vmatpush3.bf16.msra.mxu0 %v6787_v35  ;;  %4327 = vmatprep.mubr.bf16.mxu0 %v260_v3  ;;  %v259_v7 = vpack.c.bf16 %v143_v6, %v143_v6  ;;  %v6830_v34 = vld [vmem:[%s9206_s1 + $0x380] sm:$0xff]   ;;  %v36_v3 = vld [vmem:[%s9207_s0 + $0xa8] sm:$0xff]  ;;  %v6849_v6 = vld [vmem:[%s9206_s1 + $0x678] sm:$0xff]  }
  0x66   :  { %6121 = vmatprep.subr.bf16.mxu0 %v6789_v37  ;;  %v6831_v35 = vld [vmem:[%s9206_s1 + $0x520] sm:$0xff]   ;;  %v88_v37 = vld [vmem:[%s9207_s0 + $0x248] sm:$0xff] }
  0x67   :  { %6038 = vmatpush3.bf16.msra.mxu1 %v6774_v8  ;;  %v6810_v8 = vld [vmem:[%s9206_s1 + $0x3a8] sm:$0xff]   ;;  %v6847_v1 = vld [vmem:[%s9206_s1 + $0x500] sm:$0xff]  }
  0x68   :  { %6039 = vmatprep.subr.bf16.mxu1 %v6776_v16  ;;  %v90_v16 = vld [vmem:[%s9207_s0 + $0x258] sm:$0xff] }
  0x69   :  { %6122 = vmatpush3.bf16.msra.mxu0 %v6791_v39  ;;  %v206_v17 = vpack.c.bf16 %v90_v16, %v32_v15  ;;  %v29_v39 = vld [vmem:[%s9207_s0 + $0x70] sm:$0xff]  ;;  %v6856_v16 = vld [vmem:[%s9206_s1 + $0x4c8] sm:$0xff]  }
  0x6a   :  { %4184 = vmatmul.mubr.bf16.gmra.mxu1 %v253_v14  ;;  %6123 = vmatprep.subr.bf16.mxu0 %v6793_v41  ;;  %v6816_v14 = vld [vmem:[%s9206_s1 + $0x3d8] sm:$0xff]   ;;  %v6855_v15 = vld [vmem:[%s9206_s1 + $0x630] sm:$0xff]  }
  0x6b   :  { %6040 = vmatpush3.bf16.msra.mxu1 %v6778_v20  ;;  %4271 = vmatprep.mubr.bf16.mxu1 %v200_v50  ;;  %v31_v20 = vld [vmem:[%s9207_s0 + $0x80] sm:$0xff]  ;;  %v146_v50 = vld [vmem:[%s9207_s0 + $0x418] sm:$0xff] }
  0x6c   :  { %6041 = vmatprep.subr.bf16.mxu1 %v6780_v22  ;;  %4328 = vmatmul.mubr.bf16.gmra.mxu0 %v259_v7  ;;  %v205_v22 = vpack.c.bf16 %v89_v21, %v31_v20  ;;  %v262_v51 = vpack.c.bf16 %v146_v50, %v146_v50  ;;  %v6850_v7 = vld [vmem:[%s9206_s1 + $0x498] sm:$0xff]   ;;  %v6860_v20 = vld [vmem:[%s9206_s1 + $0x4c0] sm:$0xff]  }
  0x6d   :  { %6124 = vmatpush3.bf16.msra.mxu0 %v6795_v43  ;;  %4415 = vmatprep.mubr.bf16.mxu0 %v206_v17  ;;  %v6833_v43 = vld [vmem:[%s9206_s1 + $0x558] sm:$0xff]   ;;  %v6857_v17 = vld [vmem:[%s9206_s1 + $0x668] sm:$0xff]   ;;  %v6861_v21 = vld [vmem:[%s9206_s1 + $0x660] sm:$0xff]  }
  0x6e   :  { %6125 = vmatprep.subr.bf16.mxu0 %v6797_v45  ;;  %v6835_v45 = vld [vmem:[%s9206_s1 + $0x518] sm:$0xff]   ;;  %v6876_v50 = vld [vmem:[%s9206_s1 + $0x5e0] sm:$0xff]  }
  0x6f   :  { %6042 = vmatpush3.bf16.msra.mxu1 %v6782_v24  ;;  %v6820_v24 = vld [vmem:[%s9206_s1 + $0x3d0] sm:$0xff]  }
  0x70   :  { %6043 = vmatprep.subr.bf16.mxu1 %v6784_v26  ;;  %v6822_v26 = vld [vmem:[%s9206_s1 + $0x390] sm:$0xff]  }
  0x71   :  { %6126 = vmatpush3.bf16.msra.mxu0 %v6799_v47  ;;  %v6837_v47 = vld [vmem:[%s9206_s1 + $0x550] sm:$0xff]  }
  0x72   :  { %6127 = vmatprep.subr.bf16.mxu0 %v6801_v55 }
  0x73   :  { %6044 = vmatpush3.bf16.msra.mxu1 %v6786_v31  ;;  %v6827_v31 = vld [vmem:[%s9206_s1 + $0x528] sm:$0xff]  }
  0x74   :  { %6045 = vmatprep.subr.bf16.mxu1 %v6788_v36  ;;  %v30_v36 = vld [vmem:[%s9207_s0 + $0x78] sm:$0xff] }
  0x75   :  { %6128 = vmatpush3.bf16.msra.mxu0 %v6803_v57  ;;  %v6841_v57 = vld [vmem:[%s9206_s1 + $0x548] sm:$0xff]  }
  0x76   :  { %6129 = vmatprep.subr.bf16.mxu0 %v6805_v59 }
  0x77   :  { %6046 = vmatpush3.bf16.msra.mxu1 %v6790_v38  ;;  %v204_v38 = vpack.c.bf16 %v88_v37, %v30_v36  ;;  %v6870_v36 = vld [vmem:[%s9206_s1 + $0x5b0] sm:$0xff]  }
  0x78   :  { %6047 = vmatprep.subr.bf16.mxu1 %v6792_v40  ;;  %v87_v40 = vld [vmem:[%s9207_s0 + $0x240] sm:$0xff]  ;;  %v6871_v37 = vld [vmem:[%s9206_s1 + $0x610] sm:$0xff]  }
  0x79   :  { %6130 = vmatpush3.bf16.msra.mxu0 %v6807_v61  ;;  %v203_v41 = vpack.c.bf16 %v87_v40, %v29_v39  ;;  %v6843_v61 = vld [vmem:[%s9206_s1 + $0x508] sm:$0xff]   ;;  %v149_v40 = vld [vmem:[%s9207_s0 + $0x430] sm:$0xff] }
  0x7a   :  { %6131 = vmatprep.subr.bf16.mxu0 %v6809_v5 }
  0x7b   :  { %6048 = vmatpush3.bf16.msra.mxu1 %v6794_v42  ;;  %v6832_v42 = vld [vmem:[%s9206_s1 + $0x4f8] sm:$0xff]  }
  0x7c   :  { %6049 = vmatprep.subr.bf16.mxu1 %v6796_v44  ;;  %v6834_v44 = vld [vmem:[%s9206_s1 + $0x4b8] sm:$0xff]  }
  0x7d   :  { %6132 = vmatpush3.bf16.msra.mxu0 %v6811_v9  ;;  %v93_v9 = vld [vmem:[%s9207_s0 + $0x270] sm:$0xff] }
  0x7e   :  { %6133 = vmatprep.subr.bf16.mxu0 %v6813_v11  ;;  %v6851_v11 = vld [vmem:[%s9206_s1 + $0x638] sm:$0xff]  }
  0x7f   :  { %6050 = vmatpush3.bf16.msra.mxu1 %v6798_v46  ;;  %v6836_v46 = vld [vmem:[%s9206_s1 + $0x4f0] sm:$0xff]  }
  0x80   :  { %6091 = vmatprep.subr.bf16.mxu1 %v6800_v54  ;;  %v261_v54 = vpack.c.bf16 %v145_v52, %v145_v52  ;;  %v6878_v52 = vld [vmem:[%s9206_s1 + $0x5a0] sm:$0xff]  }
  0x81   :  { %6134 = vmatpush3.bf16.msra.mxu0 %v6815_v13  ;;  %v6853_v13 = vld [vmem:[%s9206_s1 + $0x670] sm:$0xff]  }
  0x82   :  { %4272 = vmatmul.mubr.bf16.vlgmr.msra.gmra.mxu1 %v199_v53  ;;  %6175 = vmatprep.subr.bf16.mxu0 %v6817_v18  ;;  %v148_v53 = vld [vmem:[%s9207_s0 + $0x428] sm:$0xff] }
  0x83   :  { %6092 = vmatpush3.bf16.msra.mxu1 %v6802_v56  ;;  %4279 = vmatprep.mubr.bf16.mxu1 %v258_v63  ;;  %v264_v55 = vpack.c.bf16 %v148_v53, %v148_v53  ;;  %v6840_v56 = vld [vmem:[%s9206_s1 + $0x4e8] sm:$0xff]   ;;  %v6845_v63 = vld [vmem:[%s9206_s1 + $0x540] sm:$0xff]  }
  0x84   :  { %6093 = vmatprep.subr.bf16.mxu1 %v6804_v58  ;;  %4416 = vmatmul.mubr.bf16.vlgmr.msra.gmra.mxu0 %v205_v22  ;;  %v147_v58 = vld [vmem:[%s9207_s0 + $0x420] sm:$0xff]  ;;  %v6858_v18 = vld [vmem:[%s9206_s1 + $0x488] sm:$0xff]  }
  0x85   :  { %6176 = vmatpush3.bf16.msra.mxu0 %v6819_v23  ;;  %4423 = vmatprep.mubr.bf16.mxu0 %v264_v55  ;;  %v263_v59 = vpack.c.bf16 %v147_v58, %v147_v58  ;;  %v6862_v22 = vld [vmem:[%s9206_s1 + $0x480] sm:$0xff]   ;;  %v40_v55 = vld [vmem:[%s9207_s0 + $0xc8] sm:$0xff]  ;;  %v6881_v58 = vld [vmem:[%s9206_s1 + $0x778] sm:$0xff]  }
  0x86   :  { %6177 = vmatprep.subr.bf16.mxu0 %v6821_v25  ;;  %v6863_v23 = vld [vmem:[%s9206_s1 + $0x620] sm:$0xff]   ;;  %v92_v25 = vld [vmem:[%s9207_s0 + $0x268] sm:$0xff] }
  0x87   :  { %6094 = vmatpush3.bf16.msra.mxu1 %v6806_v60  ;;  %v6842_v60 = vld [vmem:[%s9206_s1 + $0x4a8] sm:$0xff]   ;;  %v6879_v53 = vld [vmem:[%s9206_s1 + $0x600] sm:$0xff]  }
  0x88   :  { %6095 = vmatprep.subr.bf16.mxu1 %v6808_v4  ;;  %v94_v4 = vld [vmem:[%s9207_s0 + $0x278] sm:$0xff] }
  0x89   :  { %6178 = vmatpush3.bf16.msra.mxu0 %v6823_v27  ;;  %v210_v5 = vpack.c.bf16 %v94_v4, %v36_v3  ;;  %v33_v27 = vld [vmem:[%s9207_s0 + $0x90] sm:$0xff] }
  0x8a   :  { %4280 = vmatmul.mubr.bf16.gmra.mxu1 %v257_v2  ;;  %6179 = vmatprep.subr.bf16.mxu0 %v6825_v29  ;;  %v6848_v2 = vld [vmem:[%s9206_s1 + $0x4d8] sm:$0xff]   ;;  %v6885_v3 = vld [vmem:[%s9206_s1 + $0x770] sm:$0xff]  }
  0x8b   :  { %6096 = vmatpush3.bf16.msra.mxu1 %v6810_v8  ;;  %4367 = vmatprep.mubr.bf16.mxu1 %v204_v38  ;;  %v35_v8 = vld [vmem:[%s9207_s0 + $0xa0] sm:$0xff]  ;;  %v150_v38 = vld [vmem:[%s9207_s0 + $0x438] sm:$0xff] }
  0x8c   :  { %6097 = vmatprep.subr.bf16.mxu1 %v6812_v10  ;;  %4424 = vmatmul.mubr.bf16.gmra.mxu0 %v263_v59  ;;  %v209_v10 = vpack.c.bf16 %v93_v9, %v35_v8  ;;  %v266_v39 = vpack.c.bf16 %v150_v38, %v150_v38  ;;  %v6882_v59 = vld [vmem:[%s9206_s1 + $0x598] sm:$0xff]   ;;  %v6889_v8 = vld [vmem:[%s9206_s1 + $0x768] sm:$0xff]   ;;  %v6902_v38 = vld [vmem:[%s9206_s1 + $0x6b0] sm:$0xff]  }
  0x8d   :  { %6180 = vmatpush3.bf16.msra.mxu0 %v6827_v31  ;;  %4511 = vmatprep.mubr.bf16.mxu0 %v210_v5  ;;  %v6865_v31 = vld [vmem:[%s9206_s1 + $0x658] sm:$0xff]   ;;  %v6886_v5 = vld [vmem:[%s9206_s1 + $0x590] sm:$0xff]   ;;  %v6890_v9 = vld [vmem:[%s9206_s1 + $0x588] sm:$0xff]  }
  0x8e   :  { %6181 = vmatprep.subr.bf16.mxu0 %v6829_v33  ;;  %v6867_v33 = vld [vmem:[%s9206_s1 + $0x618] sm:$0xff]  }
  0x8f   :  { %6098 = vmatpush3.bf16.msra.mxu1 %v6814_v12  ;;  %v6852_v12 = vld [vmem:[%s9206_s1 + $0x4d0] sm:$0xff]  }
  0x90   :  { %6099 = vmatprep.subr.bf16.mxu1 %v6816_v14  ;;  %v6854_v14 = vld [vmem:[%s9206_s1 + $0x490] sm:$0xff]  }
  0x91   :  { %6182 = vmatpush3.bf16.msra.mxu0 %v6831_v35  ;;  %v6869_v35 = vld [vmem:[%s9206_s1 + $0x650] sm:$0xff]  }
  0x92   :  { %6183 = vmatprep.subr.bf16.mxu0 %v6833_v43 }
  0x93   :  { %6100 = vmatpush3.bf16.msra.mxu1 %v6818_v19  ;;  %v6859_v19 = vld [vmem:[%s9206_s1 + $0x628] sm:$0xff]  }
  0x94   :  { %6101 = vmatprep.subr.bf16.mxu1 %v6820_v24  ;;  %v34_v24 = vld [vmem:[%s9207_s0 + $0x98] sm:$0xff] }
  0x95   :  { %6184 = vmatpush3.bf16.msra.mxu0 %v6835_v45  ;;  %v6873_v45 = vld [vmem:[%s9206_s1 + $0x648] sm:$0xff]  }
  0x96   :  { %6185 = vmatprep.subr.bf16.mxu0 %v6837_v47 }
  0x97   :  { %6102 = vmatpush3.bf16.msra.mxu1 %v6822_v26  ;;  %v208_v26 = vpack.c.bf16 %v92_v25, %v34_v24  ;;  %v6896_v24 = vld [vmem:[%s9206_s1 + $0x6f8] sm:$0xff]  }
  0x98   :  { %6103 = vmatprep.subr.bf16.mxu1 %v6824_v28  ;;  %v91_v28 = vld [vmem:[%s9207_s0 + $0x260] sm:$0xff]  ;;  %v6897_v25 = vld [vmem:[%s9206_s1 + $0x758] sm:$0xff]  }
  0x99   :  { %6186 = vmatpush3.bf16.msra.mxu0 %v6839_v49  ;;  %v207_v29 = vpack.c.bf16 %v91_v28, %v33_v27  ;;  %v6875_v49 = vld [vmem:[%s9206_s1 + $0x608] sm:$0xff]   ;;  %v6898_v28 = vld [vmem:[%s9206_s1 + $0x6b8] sm:$0xff]  }
  0x9a   :  { %6187 = vmatprep.subr.bf16.mxu0 %v6841_v57 }
  0x9b   :  { %6104 = vmatpush3.bf16.msra.mxu1 %v6826_v30  ;;  %v6864_v30 = vld [vmem:[%s9206_s1 + $0x5f8] sm:$0xff]  }
  0x9c   :  { %6105 = vmatprep.subr.bf16.mxu1 %v6828_v32  ;;  %v6866_v32 = vld [vmem:[%s9206_s1 + $0x5b8] sm:$0xff]  }
  0x9d   :  { %6188 = vmatpush3.bf16.msra.mxu0 %v6843_v61  ;;  %v97_v61 = vld [vmem:[%s9207_s0 + $0x290] sm:$0xff] }
  0x9e   :  { %6189 = vmatprep.subr.bf16.mxu0 %v6845_v63 }
  0x9f   :  { %6106 = vmatpush3.bf16.msra.mxu1 %v6830_v34  ;;  %v6868_v34 = vld [vmem:[%s9206_s1 + $0x5f0] sm:$0xff]  }
  0xa0   :  { %6147 = vmatprep.subr.bf16.mxu1 %v6832_v42  ;;  %v265_v42 = vpack.c.bf16 %v149_v40, %v149_v40  ;;  %v6903_v40 = vld [vmem:[%s9206_s1 + $0x710] sm:$0xff]  }
  0xa1   :  { %6190 = vmatpush3.bf16.msra.mxu0 %v6847_v1  ;;  %v6884_v1 = vld [vmem:[%s9206_s1 + $0x5d0] sm:$0xff]  }
  0xa2   :  { %4368 = vmatmul.mubr.bf16.vlgmr.msra.gmra.mxu1 %v203_v41  ;;  %6231 = vmatprep.subr.bf16.mxu0 %v6849_v6  ;;  %v152_v41 = vld [vmem:[%s9207_s0 + $0x448] sm:$0xff]  ;;  %v6887_v6 = vld [vmem:[%s9206_s1 + $0x730] sm:$0xff]  }
  0xa3   :  { %6148 = vmatpush3.bf16.msra.mxu1 %v6834_v44  ;;  %4375 = vmatprep.mubr.bf16.mxu1 %v262_v51  ;;  %v268_v43 = vpack.c.bf16 %v152_v41, %v152_v41  ;;  %v6872_v44 = vld [vmem:[%s9206_s1 + $0x5e8] sm:$0xff]   ;;  %v6877_v51 = vld [vmem:[%s9206_s1 + $0x640] sm:$0xff]  }
  0xa4   :  { %6149 = vmatprep.subr.bf16.mxu1 %v6836_v46  ;;  %4512 = vmatmul.mubr.bf16.vlgmr.msra.gmra.mxu0 %v209_v10  ;;  %v151_v46 = vld [vmem:[%s9207_s0 + $0x440] sm:$0xff]  ;;  %v6891_v10 = vld [vmem:[%s9206_s1 + $0x728] sm:$0xff]  }
  0xa5   :  { %6232 = vmatpush3.bf16.msra.mxu0 %v6851_v11  ;;  %4519 = vmatprep.mubr.bf16.mxu0 %v268_v43  ;;  %v267_v47 = vpack.c.bf16 %v151_v46, %v151_v46  ;;  %v6892_v11 = vld [vmem:[%s9206_s1 + $0x5c0] sm:$0xff]   ;;  %v153_v43 = vld [vmem:[%s9207_s0 + $0x450] sm:$0xff] }
  0xa6   :  { %6233 = vmatprep.subr.bf16.mxu0 %v6853_v13  ;;  %v6893_v13 = vld [vmem:[%s9206_s1 + $0x760] sm:$0xff]   ;;  %v269_v46 = vpack.c.bf16 %v153_v43, %v153_v43  ;;  %v42_v43 = vld [vmem:[%s9207_s0 + $0xd8] sm:$0xff] }
  0xa7   :  { %6150 = vmatpush3.bf16.msra.mxu1 %v6838_v48  ;;  %v6874_v48 = vld [vmem:[%s9206_s1 + $0x5a8] sm:$0xff]  }
  0xa8   :  { %6151 = vmatprep.subr.bf16.mxu1 %v6840_v56  ;;  %v98_v56 = vld [vmem:[%s9207_s0 + $0x298] sm:$0xff] }
  0xa9   :  { %6234 = vmatpush3.bf16.msra.mxu0 %v6855_v15  ;;  %v214_v57 = vpack.c.bf16 %v98_v56, %v40_v55  ;;  %v6895_v15 = vld [vmem:[%s9206_s1 + $0x720] sm:$0xff]  }
  0xaa   :  { %4376 = vmatmul.mubr.bf16.gmra.mxu1 %v261_v54  ;;  %6235 = vmatprep.subr.bf16.mxu0 %v6857_v17  ;;  %v6880_v54 = vld [vmem:[%s9206_s1 + $0x5d8] sm:$0xff]   ;;  %v96_v17 = vld [vmem:[%s9207_s0 + $0x288] sm:$0xff]  ;;  %v5432_v55 = vld [vmem:[%s9208_s2] ss:$0 sm:$0xff] }
  0xab   :  { %6152 = vmatpush3.bf16.msra.mxu1 %v6842_v60  ;;  %4463 = vmatprep.mubr.bf16.mxu1 %v208_v26  ;;  %v39_v60 = vld [vmem:[%s9207_s0 + $0xc0] sm:$0xff] }
  0xac   :  { %6153 = vmatprep.subr.bf16.mxu1 %v6844_v62  ;;  %4520 = vmatmul.mubr.bf16.gmra.mxu0 %v267_v47  ;;  %v213_v63 = vpack.c.bf16 %v97_v61, %v39_v60  ;;  %v6909_v56 = vld [vmem:[%s9206_s1 + $0x740] sm:$0xff]   ;;  %v6912_v60 = vld [vmem:[%s9206_s1 + $0x6d8] sm:$0xff]   ;;  %v44_v61 = vld [vmem:[%s9207_s0 + $0xe8] sm:$0xff] }
  0xad   :  { %6236 = vmatpush3.bf16.msra.mxu0 %v6859_v19  ;;  %4607 = vmatprep.mubr.bf16.mxu0 %v214_v57  ;;  %v37_v19 = vld [vmem:[%s9207_s0 + $0xb0] sm:$0xff]  ;;  %v6910_v57 = vld [vmem:[%s9206_s1 + $0x6a0] sm:$0xff]  }
  0xae   :  { %6237 = vmatprep.subr.bf16.mxu0 %v6861_v21 }
  0xaf   :  { %6154 = vmatpush3.bf16.msra.mxu1 %v6846_v0  ;;  %v6883_v0 = vld [vmem:[%s9206_s1 + $0x738] sm:$0xff]  }
  0xb0   :  { %6155 = vmatprep.subr.bf16.mxu1 %v6848_v2 }
  0xb1   :  { %6238 = vmatpush3.bf16.msra.mxu0 %v6863_v23 }
  0xb2   :  { %6239 = vmatprep.subr.bf16.mxu0 %v6865_v31 }
  0xb3   :  { %6156 = vmatpush3.bf16.msra.mxu1 %v6850_v7  ;;  %v6888_v7 = vld [vmem:[%s9206_s1 + $0x5c8] sm:$0xff]  }
  0xb4   :  { %6157 = vmatprep.subr.bf16.mxu1 %v6852_v12 }
  0xb5   :  { %6240 = vmatpush3.bf16.msra.mxu0 %v6867_v33  ;;  %v6900_v33 = vld [vmem:[%s9206_s1 + $0x6f0] sm:$0xff]  }
  0xb6   :  { %6241 = vmatprep.subr.bf16.mxu0 %v6869_v35  ;;  %v6901_v35 = vld [vmem:[%s9206_s1 + $0x750] sm:$0xff]  }
  0xb7   :  { %6158 = vmatpush3.bf16.msra.mxu1 %v6854_v14  ;;  %v6894_v14 = vld [vmem:[%s9206_s1 + $0x580] sm:$0xff]  }
  0xb8   :  { %6159 = vmatprep.subr.bf16.mxu1 %v6856_v16  ;;  %v38_v16 = vld [vmem:[%s9207_s0 + $0xb8] sm:$0xff] }
  0xb9   :  { %6242 = vmatpush3.bf16.msra.mxu0 %v6871_v37 }
  0xba   :  { %6243 = vmatprep.subr.bf16.mxu0 %v6873_v45 }
  0xbb   :  { %6160 = vmatpush3.bf16.msra.mxu1 %v6858_v18  ;;  %v212_v18 = vpack.c.bf16 %v96_v17, %v38_v16 }
  0xbc   :  { %6161 = vmatprep.subr.bf16.mxu1 %v6860_v20  ;;  %v95_v20 = vld [vmem:[%s9207_s0 + $0x280] sm:$0xff] }
  0xbd   :  { %6244 = vmatpush3.bf16.msra.mxu0 %v6875_v49  ;;  %v211_v23 = vpack.c.bf16 %v95_v20, %v37_v19  ;;  %v6905_v49 = vld [vmem:[%s9206_s1 + $0x748] sm:$0xff]  }
  0xbe   :  { %6245 = vmatprep.subr.bf16.mxu0 %v6877_v51 }
  0xbf   :  { %6162 = vmatpush3.bf16.msra.mxu1 %v6862_v22 }
  0xc0   :  { %6203 = vmatprep.subr.bf16.mxu1 %v6864_v30  ;;  %v6899_v30 = vld [vmem:[%s9206_s1 + $0x718] sm:$0xff]  }
  0xc1   :  { %6246 = vmatpush3.bf16.msra.mxu0 %v6879_v53  ;;  %v6907_v53 = vld [vmem:[%s9206_s1 + $0x708] sm:$0xff]  }
  0xc2   :  { %4464 = vmatmul.mubr.bf16.vlgmr.msra.gmra.mxu1 %v207_v29  ;;  %6287 = vmatprep.subr.bf16.mxu0 %v6881_v58  ;;  %v6911_v58 = vld [vmem:[%s9206_s1 + $0x700] sm:$0xff]  }
  0xc3   :  { %6204 = vmatpush3.bf16.msra.mxu1 %v6866_v32  ;;  %4471 = vmatprep.mubr.bf16.mxu1 %v266_v39 }
  0xc4   :  { %6205 = vmatprep.subr.bf16.mxu1 %v6868_v34  ;;  %4608 = vmatmul.mubr.bf16.vlgmr.msra.gmra.mxu0 %v213_v63 }
  0xc5   :  { %6288 = vmatpush3.bf16.msra.mxu0 %v6883_v0  ;;  %v6913_v0 = vld [vmem:[%s9206_s1 + $0x878] sm:$0xff]  }
  0xc6   :  { %6289 = vmatprep.subr.bf16.mxu0 %v6885_v3 }
  0xc7   :  { %6206 = vmatpush3.bf16.msra.mxu1 %v6870_v36 }
  0xc8   :  { %6207 = vmatprep.subr.bf16.mxu1 %v6872_v44  ;;  %v156_v44 = vld [vmem:[%s9207_s0 + $0x468] sm:$0xff] }
  0xc9   :  { %6290 = vmatpush3.bf16.msra.mxu0 %v6887_v6  ;;  %v272_v47 = vpack.c.bf16 %v156_v44, %v156_v44  ;;  %v100_v44 = vld [vmem:[%s9207_s0 + $0x2a8] sm:$0xff] }
  0xca   :  { %4472 = vmatmul.mubr.bf16.gmra.mxu1 %v265_v42  ;;  %6291 = vmatprep.subr.bf16.mxu0 %v6889_v8  ;;  %v154_v42 = vld [vmem:[%s9207_s0 + $0x458] sm:$0xff]  ;;  %v101_v8 = vld [vmem:[%s9207_s0 + $0x2b0] sm:$0xff] }
  0xcb   :  { %6208 = vmatpush3.bf16.msra.mxu1 %v6874_v48  ;;  %4559 = vmatprep.mubr.bf16.mxu1 %v212_v18  ;;  %v270_v45 = vpack.c.bf16 %v154_v42, %v154_v42  ;;  %v6904_v48 = vld [vmem:[%s9206_s1 + $0x6e8] sm:$0xff]   ;;  %v6918_v18 = vld [vmem:[%s9206_s1 + $0x690] sm:$0xff]   ;;  %v6927_v42 = vld [vmem:[%s9206_s1 + $0x820] sm:$0xff]  }
  0xcc   :  { %6209 = vmatprep.subr.bf16.mxu1 %v6876_v50  ;;  %4615 = vmatprep.mubr.bf16.mxu0 %v272_v47  ;;  %v155_v50 = vld [vmem:[%s9207_s0 + $0x460] sm:$0xff]  ;;  %v216_v47 = vpack.c.bf16 %v100_v44, %v42_v43  ;;  %v6952_v44 = vld [vmem:[%s9206_s1 + $0x7c8] sm:$0xff]  }
  0xcd   :  { %6292 = vmatpush3.bf16.msra.mxu0 %v6891_v10  ;;  %v271_v51 = vpack.c.bf16 %v155_v50, %v155_v50  ;;  %v6915_v10 = vld [vmem:[%s9206_s1 + $0x838] sm:$0xff]  }
  0xce   :  { %6293 = vmatprep.subr.bf16.mxu0 %v6893_v13 }
  0xcf   :  { %6210 = vmatpush3.bf16.msra.mxu1 %v6878_v52  ;;  %v6906_v52 = vld [vmem:[%s9206_s1 + $0x6a8] sm:$0xff]   ;;  %4616 = vmatmul.mubr.bf16.gmra.mxu0 %v271_v51  ;;  %v6929_v51 = vld [vmem:[%s9206_s1 + $0x858] sm:$0xff]  }
  0xd0   :  { %6211 = vmatprep.subr.bf16.mxu1 %v6880_v54  ;;  %v6908_v54 = vld [vmem:[%s9206_s1 + $0x6e0] sm:$0xff]  }
  0xd1   :  { %6294 = vmatpush3.bf16.msra.mxu0 %v6895_v15  ;;  %v6917_v15 = vld [vmem:[%s9206_s1 + $0x870] sm:$0xff]  }
  0xd2   :  { %6295 = vmatprep.subr.bf16.mxu0 %v6897_v25 }
  0xd3   :  { %6212 = vmatpush3.bf16.msra.mxu1 %v6882_v59 }
  0xd4   :  { %6213 = vmatprep.subr.bf16.mxu1 %v6884_v1 }
  0xd5   :  { %6296 = vmatpush3.bf16.msra.mxu0 %v6899_v30 }
  0xd6   :  { %6297 = vmatprep.subr.bf16.mxu0 %v6901_v35 }
  0xd7   :  { %6214 = vmatpush3.bf16.msra.mxu1 %v6886_v5  ;;  %v6914_v5 = vld [vmem:[%s9206_s1 + $0x698] sm:$0xff]  }
  0xd8   :  { %6215 = vmatprep.subr.bf16.mxu1 %v6888_v7  ;;  %v43_v7 = vld [vmem:[%s9207_s0 + $0xe0] sm:$0xff] }
  0xd9   :  { %6298 = vmatpush3.bf16.msra.mxu0 %v6903_v40 }
  0xda   :  { %6299 = vmatprep.subr.bf16.mxu0 %v6905_v49  ;;  %v6928_v49 = vld [vmem:[%s9206_s1 + $0x7f8] sm:$0xff]  }
  0xdb   :  { %6216 = vmatpush3.bf16.msra.mxu1 %v6890_v9  ;;  %v217_v9 = vpack.c.bf16 %v101_v8, %v43_v7  ;;  %v6937_v7 = vld [vmem:[%s9206_s1 + $0x848] sm:$0xff]   ;;  %v159_v8 = vld [vmem:[%s9207_s0 + $0x480] sm:$0xff] }
  0xdc   :  { %6217 = vmatprep.subr.bf16.mxu1 %v6892_v11 }
  0xdd   :  { %6300 = vmatpush3.bf16.msra.mxu0 %v6907_v53 }
  0xde   :  { %6301 = vmatprep.subr.bf16.mxu0 %v6909_v56  ;;  %v6932_v56 = vld [vmem:[%s9206_s1 + $0x7f0] sm:$0xff]  }
  0xdf   :  { %6218 = vmatpush3.bf16.msra.mxu1 %v6894_v14 }
  0xe0   :  { %6259 = vmatprep.subr.bf16.mxu1 %v6896_v24 }
  0xe1   :  { %6302 = vmatpush3.bf16.msra.mxu0 %v6911_v58  ;;  %v6933_v58 = vld [vmem:[%s9206_s1 + $0x850] sm:$0xff]  }
  0xe2   :  { %v5911_v62 = vpop.f32.mrf.mxu1  ;;  %4560 = vmatmul.mubr.bf16.vlgmr.msra.gmra.mxu1 %v211_v23  ;;  %6343 = vmatprep.subr.bf16.mxu0 %v6913_v0  ;;  %v6920_v23 = vld [vmem:[%s9206_s1 + $0x6c8] sm:$0xff]   ;;  %v157_v0 = vld [vmem:[%s9207_s0 + $0x470] sm:$0xff] }
  0xe3   :  { %6260 = vmatpush3.bf16.msra.mxu1 %v6898_v28  ;;  %4567 = vmatprep.mubr.bf16.mxu1 %v270_v45  ;;  %v41_v45 = vld [vmem:[%s9207_s0 + $0xd0] sm:$0xff] }
  0xe4   :  { %v5912_v2 = vpop.f32.mrf.mxu1  ;;  %v5967_v22 = vpop.f32.mrf.mxu0  ;;  %6261 = vmatprep.subr.bf16.mxu1 %v6900_v33 }
  0xe5   :  { %v8001_v4 = vadd.f32 %v5912_v2, %v5911_v62  ;;  %v102_v62 = vld [vmem:[%s9207_s0 + $0x2b8] sm:$0xff] }
  0xe6   :  { %v8024_v12 = vpop.f32.mrf.mxu1  ;;  %v5968_v27 = vpop.f32.mrf.mxu0  ;;  %v218_v63 = vpack.c.bf16 %v102_v62, %v44_v61  ;;  %v6935_v61 = vld [vmem:[%s9206_s1 + $0x810] sm:$0xff]  }
  0xe7   :  { %v8058_v29 = vadd.f32 %v5968_v27, %v5967_v22  ;;  %6262 = vmatpush3.bf16.msra.mxu1 %v6902_v38  ;;  %v4034_v2 = vadd.f32 %v8001_v4, %v5432_v55  ;;  %v6921_v27 = vld [vmem:[%s9206_s1 + $0x868] sm:$0xff]  }
  0xe8   :  { %v8047_v21 = vpop.f32.mrf.mxu1  ;;  %v5970_v32 = vpop.f32.mrf.mxu0  ;;  %6263 = vmatprep.subr.bf16.mxu1 %v6904_v48  ;;  %4703 = vmatprep.mubr.bf16.mxu0 %v218_v63  ;;  %v158_v63 = vld [vmem:[%s9207_s0 + $0x478] sm:$0xff] }
  0xe9   :  { %v5916_v3 = vadd.f32 %v8047_v21, %v8024_v12  ;;  %v6916_v12 = vld [vmem:[%s9206_s1 + $0x6d0] sm:$0xff]   ;;  %4704 = vmatmul.mubr.bf16.vlgmr.msra.gmra.mxu0 %v217_v9  ;;  %v6938_v9 = vld [vmem:[%s9206_s1 + $0x7a8] sm:$0xff]  }
  0xea   :  { %v5917_v26 = vpop.f32.mrf.mxu1  ;;  %v5971_v37 = vpop.f32.mrf.mxu0  ;;  %4568 = vmatmul.mubr.bf16.gmra.mxu1 %v269_v46  ;;  %6344 = vmatpush3.bf16.msra.mxu0 %v6915_v10  ;;  %v6919_v21 = vld [vmem:[%s9206_s1 + $0x830] sm:$0xff]   ;;  %v99_v46 = vld [vmem:[%s9207_s0 + $0x2a0] sm:$0xff]  ;;  %v6939_v10 = vld [vmem:[%s9206_s1 + $0x808] sm:$0xff]  }
  0xeb   :  { %v8074_v39 = vadd.f32 %v5971_v37, %v5970_v32  ;;  %6264 = vmatpush3.bf16.msra.mxu1 %v6906_v52  ;;  %v4037_v14 = vadd.f32 %v5916_v3, %v5432_v55  ;;  %6345 = vmatprep.subr.bf16.mxu0 %v6917_v15  ;;  %v215_v48 = vpack.c.bf16 %v99_v46, %v41_v45  ;;  %v6930_v52 = vld [vmem:[%s9206_s1 + $0x7b8] sm:$0xff]  }
  0xec   :  { %v5918_v31 = vpop.f32.mrf.mxu1  ;;  %6265 = vmatprep.subr.bf16.mxu1 %v6908_v54  ;;  %v5973_v20 = vpop.f32.mrf.mxu0  ;;  %4655 = vmatprep.mubr.bf16.mxu1 %v216_v47  ;;  %v6931_v54 = vld [vmem:[%s9206_s1 + $0x818] sm:$0xff]   ;;  %v273_v3 = vpack.c.bf16 %v157_v0, %v157_v0  ;;  %v6953_v47 = vld [vmem:[%s9206_s1 + $0x968] sm:$0xff]  }
  0xed   :  { %v8066_v34 = vadd.f32 %v5918_v31, %v5917_v26  ;;  %v6922_v31 = vld [vmem:[%s9206_s1 + $0x688] sm:$0xff]  }
  0xee   :  { %v5920_v36 = vpop.f32.mrf.mxu1  ;;  %v5974_v25 = vpop.f32.mrf.mxu0  ;;  %6346 = vmatpush3.bf16.msra.mxu0 %v6919_v21  ;;  %v106_v21 = vld [vmem:[%s9207_s0 + $0x2d8] sm:$0xff] }
  0xef   :  { %6266 = vmatpush3.bf16.msra.mxu1 %v6910_v57  ;;  %v4042_v26 = vadd.f32 %v8066_v34, %v5432_v55  ;;  %6347 = vmatprep.subr.bf16.mxu0 %v6921_v27  ;;  %v6923_v34 = vld [vmem:[%s9206_s1 + $0x828] sm:$0xff]   ;;  %v6924_v36 = vld [vmem:[%s9206_s1 + $0x6c0] sm:$0xff]  }
  0xf0   :  { %v5921_v41 = vpop.f32.mrf.mxu1  ;;  %6267 = vmatprep.subr.bf16.mxu1 %v6912_v60  ;;  %v5976_v32 = vpop.f32.mrf.mxu0 }
  0xf1   :  { %v6926_v41 = vld [vmem:[%s9206_s1 + $0x680] sm:$0xff]  }
  0xf2   :  { %v5977_v37 = vpop.f32.mrf.mxu0  ;;  %6348 = vmatpush3.bf16.msra.mxu0 %v6923_v34  ;;  %v6948_v34 = vld [vmem:[%s9206_s1 + $0x7d0] sm:$0xff]  }
  0xf3   :  { %6268 = vmatpush3.bf16.msra.mxu1 %v6914_v5  ;;  %v6949_v37 = vld [vmem:[%s9206_s1 + $0x970] sm:$0xff]  }
  0xf4   :  { %6269 = vmatprep.subr.bf16.mxu1 %v6916_v12 }
  0xf7   :  { %6270 = vmatpush3.bf16.msra.mxu1 %v6918_v18 }
  0xf8   :  { %6271 = vmatprep.subr.bf16.mxu1 %v6920_v23 }
  0xfb   :  { %6272 = vmatpush3.bf16.msra.mxu1 %v6922_v31 }
  0xfc   :  { %6273 = vmatprep.subr.bf16.mxu1 %v6924_v36 }
  0xff   :  { %6274 = vmatpush3.bf16.msra.mxu1 %v6926_v41 }
 0x100   :  { %6315 = vmatprep.subr.bf16.mxu1 %v6928_v49 }
 0x102   :  { %v5939_v59 = vpop.f32.mrf.mxu1  ;;  %4656 = vmatmul.mubr.bf16.vlgmr.msra.gmra.mxu1 %v215_v48 }
 0x103   :  { %6316 = vmatpush3.bf16.msra.mxu1 %v6930_v52 }
 0x104   :  { %v5940_v1 = vpop.f32.mrf.mxu1  ;;  %v6023_v50 = vpop.f32.mrf.mxu0  ;;  %6317 = vmatprep.subr.bf16.mxu1 %v6932_v56  ;;  %v6957_v56 = vld [vmem:[%s9206_s1 + $0x960] sm:$0xff]  }
 0x105   :  { %v5941_v6 = vadd.f32 %v5940_v1, %v5939_v59  ;;  %v6934_v59 = vld [vmem:[%s9206_s1 + $0x7b0] sm:$0xff]   ;;  %v160_v1 = vld [vmem:[%s9207_s0 + $0x488] sm:$0xff] }
 0x106   :  { %v5942_v4 = vpop.f32.mrf.mxu1  ;;  %v6024_v53 = vpop.f32.mrf.mxu0  ;;  %v276_v5 = vpack.c.bf16 %v160_v1, %v160_v1  ;;  %v6960_v1 = vld [vmem:[%s9206_s1 + $0x8f8] sm:$0xff]  }
 0x107   :  { %v4082_v11 = vadd.f32 %v5941_v6, %v4034_v2  ;;  %v6025_v55 = vadd.f32 %v6024_v53, %v6023_v50  ;;  %6318 = vmatpush3.bf16.msra.mxu1 %v6934_v59  ;;  %v274_v2 = vpack.c.bf16 %v158_v63, %v158_v63  ;;  %v6936_v6 = vld [vmem:[%s9206_s1 + $0x7e8] sm:$0xff]   ;;  %v46_v59 = vld [vmem:[%s9207_s0 + $0xf8] sm:$0xff] }
 0x108   :  { %v5943_v13 = vpop.f32.mrf.mxu1  ;;  %v6026_v57 = vpop.f32.mrf.mxu0  ;;  %4711 = vmatprep.mubr.bf16.mxu0 %v276_v5  ;;  %6319 = vmatprep.subr.bf16.mxu1 %v6936_v6  ;;  %v6954_v50 = vld [vmem:[%s9206_s1 + $0x788] sm:$0xff]   ;;  %v6962_v5 = vld [vmem:[%s9206_s1 + $0x8b8] sm:$0xff]  }
 0x109   :  { %v5944_v16 = vadd.f32 %v5943_v13, %v5942_v4  ;;  %v8152_v17 = vadd.f32 %v8058_v29, %v4082_v11  ;;  %v5975_v29 = vadd.f32 %v5974_v25, %v5973_v20  ;;  %4663 = vmatprep.mubr.bf16.mxu1 %v274_v2  ;;  %v275_v4 = vpack.c.bf16 %v159_v8, %v159_v8  ;;  %v6940_v11 = vld [vmem:[%s9206_s1 + $0x7e0] sm:$0xff]   ;;  %v48_v20 = vld [vmem:[%s9207_s0 + $0x108] sm:$0xff] }
 0x10a   :  { %v5945_v19 = vpop.f32.mrf.mxu1  ;;  %v6027_v60 = vpop.f32.mrf.mxu0  ;;  %4664 = vmatmul.mubr.bf16.gmra.mxu1 %v273_v3  ;;  %v6941_v13 = vld [vmem:[%s9206_s1 + $0x840] sm:$0xff]   ;;  %v222_v23 = vpack.c.bf16 %v106_v21, %v48_v20  ;;  %v6955_v53 = vld [vmem:[%s9206_s1 + $0x928] sm:$0xff]   ;;  %v6961_v3 = vld [vmem:[%s9206_s1 + $0x958] sm:$0xff]  }
 0x10b   :  { %v4085_v22 = vadd.f32 %v5944_v16, %v4037_v14  ;;  %v8226_v62 = vadd.f32 %v6027_v60, %v6026_v57  ;;  %4712 = vmatmul.mubr.bf16.gmra.mxu0 %v275_v4  ;;  %6320 = vmatpush3.bf16.msra.mxu1 %v6938_v9  ;;  %v6942_v14 = vld [vmem:[%s9206_s1 + $0x7a0] sm:$0xff]   ;;  %v104_v60 = vld [vmem:[%s9207_s0 + $0x2c8] sm:$0xff]  ;;  %v6964_v4 = vld [vmem:[%s9206_s1 + $0x8f0] sm:$0xff]  }
 0x10c   :  { %v5946_v24 = vpop.f32.mrf.mxu1  ;;  %6321 = vmatprep.subr.bf16.mxu1 %v6940_v11  ;;  %v6943_v16 = vld [vmem:[%s9206_s1 + $0x800] sm:$0xff]   ;;  %4799 = vmatprep.mubr.bf16.mxu0 %v222_v23  ;;  %v220_v63 = vpack.c.bf16 %v104_v60, %v46_v59  ;;  %v6966_v11 = vld [vmem:[%s9206_s1 + $0x8b0] sm:$0xff]   ;;  %v6969_v23 = vld [vmem:[%s9206_s1 + $0x948] sm:$0xff]  }
 0x10d   :  { %v5947_v28 = vadd.f32 %v5946_v24, %v5945_v19  ;;  %v8168_v30 = vadd.f32 %v8074_v39, %v4085_v22  ;;  %v6925_v39 = vld [vmem:[%s9206_s1 + $0x860] sm:$0xff]   ;;  %v6944_v19 = vld [vmem:[%s9206_s1 + $0x7d8] sm:$0xff]   ;;  %v6984_v60 = vld [vmem:[%s9206_s1 + $0x8c8] sm:$0xff]  }
 0x10e   :  { %v5948_v33 = vpop.f32.mrf.mxu1  ;;  %6349 = vmatprep.subr.bf16.mxu0 %v6925_v39  ;;  %v6945_v24 = vld [vmem:[%s9206_s1 + $0x978] sm:$0xff]   ;;  %v6029_v39 = vpop.f32.mrf.mxu0  ;;  %v6958_v57 = vld [vmem:[%s9206_s1 + $0x780] sm:$0xff]   ;;  %4751 = vmatprep.mubr.bf16.mxu1 %v220_v63  ;;  %v6985_v63 = vld [vmem:[%s9206_s1 + $0xa68] sm:$0xff]  }
 0x10f   :  { %v4090_v35 = vadd.f32 %v5947_v28, %v4042_v26  ;;  %6350 = vmatpush3.bf16.msra.mxu0 %v6927_v42  ;;  %6322 = vmatpush3.bf16.msra.mxu1 %v6942_v14  ;;  %v6946_v26 = vld [vmem:[%s9206_s1 + $0x798] sm:$0xff]   ;;  %v47_v28 = vld [vmem:[%s9207_s0 + $0x100] sm:$0xff] }
 0x110   :  { %v5949_v38 = vpop.f32.mrf.mxu1  ;;  %6351 = vmatprep.subr.bf16.mxu0 %v6929_v51  ;;  %6323 = vmatprep.subr.bf16.mxu1 %v6944_v19  ;;  %v6947_v33 = vld [vmem:[%s9206_s1 + $0x938] sm:$0xff]   ;;  %v6030_v45 = vpop.f32.mrf.mxu0 }
 0x111   :  { %v8182_v40 = vadd.f32 %v5975_v29, %v4090_v35  ;;  %v105_v29 = vld [vmem:[%s9207_s0 + $0x2d0] sm:$0xff]  ;;  %v6031_v49 = vadd.f32 %v6030_v45, %v6029_v39 }
 0x112   :  { %v6950_v38 = vld [vmem:[%s9206_s1 + $0x790] sm:$0xff]   ;;  %v6032_v51 = vpop.f32.mrf.mxu0 }
 0x113   :  { %6352 = vmatpush3.bf16.msra.mxu0 %v6931_v54  ;;  %6324 = vmatpush3.bf16.msra.mxu1 %v6946_v26  ;;  %v6970_v26 = vld [vmem:[%s9206_s1 + $0x8a8] sm:$0xff]   ;;  %v6980_v51 = vld [vmem:[%s9206_s1 + $0x8d0] sm:$0xff]  }
 0x114   :  { %6353 = vmatprep.subr.bf16.mxu0 %v6933_v58  ;;  %6325 = vmatprep.subr.bf16.mxu1 %v6948_v34  ;;  %v6959_v58 = vld [vmem:[%s9206_s1 + $0x920] sm:$0xff]  }
 0x115   :  { %v6975_v34 = vld [vmem:[%s9206_s1 + $0x900] sm:$0xff]  }
 0x117   :  { %6354 = vmatpush3.bf16.msra.mxu0 %v6935_v61  ;;  %6326 = vmatpush3.bf16.msra.mxu1 %v6950_v38  ;;  %v45_v61 = vld [vmem:[%s9207_s0 + $0xf0] sm:$0xff]  ;;  %v110_v38 = vld [vmem:[%s9207_s0 + $0x2f8] sm:$0xff] }
 0x118   :  { %6355 = vmatprep.subr.bf16.mxu0 %v6937_v7  ;;  %6327 = vmatprep.subr.bf16.mxu1 %v6952_v44  ;;  %v6963_v7 = vld [vmem:[%s9206_s1 + $0x918] sm:$0xff]  }
 0x119   :  { %v6978_v44 = vld [vmem:[%s9206_s1 + $0x898] sm:$0xff]  }
 0x11b   :  { %6356 = vmatpush3.bf16.msra.mxu0 %v6939_v10  ;;  %6328 = vmatpush3.bf16.msra.mxu1 %v6954_v50  ;;  %v6965_v10 = vld [vmem:[%s9206_s1 + $0x950] sm:$0xff]   ;;  %v6979_v50 = vld [vmem:[%s9206_s1 + $0xa38] sm:$0xff]  }
 0x11c   :  { %6357 = vmatprep.subr.bf16.mxu0 %v6941_v13  ;;  %v6967_v13 = vld [vmem:[%s9206_s1 + $0x910] sm:$0xff]  }
 0x11f   :  { %6358 = vmatpush3.bf16.msra.mxu0 %v6943_v16  ;;  %v161_v16 = vld [vmem:[%s9207_s0 + $0x490] sm:$0xff] }
 0x120   :  { %6399 = vmatprep.subr.bf16.mxu0 %v6945_v24  ;;  %v277_v20 = vpack.c.bf16 %v161_v16, %v161_v16  ;;  %v163_v24 = vld [vmem:[%s9207_s0 + $0x4a0] sm:$0xff] }
 0x122   :  { %v5995_v12 = vpop.f32.mrf.mxu1 }
 0x124   :  { %v5996_v15 = vpop.f32.mrf.mxu1 }
 0x125   :  { %v5997_v18 = vadd.f32 %v5996_v15, %v5995_v12  ;;  %v162_v15 = vld [vmem:[%s9207_s0 + $0x498] sm:$0xff] }
 0x126   :  { %v5998_v22 = vpop.f32.mrf.mxu1  ;;  %v278_v19 = vpack.c.bf16 %v162_v15, %v162_v15 }
 0x127   :  { %v4178_v25 = vadd.f32 %v5997_v18, %v8152_v17  ;;  %v221_v17 = vpack.c.bf16 %v105_v29, %v47_v28  ;;  %v164_v18 = vld [vmem:[%s9207_s0 + $0x4a8] sm:$0xff]  ;;  %v6972_v28 = vld [vmem:[%s9206_s1 + $0x8e0] sm:$0xff]  }
 0x128   :  { %v5999_v27 = vpop.f32.mrf.mxu1  ;;  %v280_v21 = vpack.c.bf16 %v164_v18, %v164_v18  ;;  %v6992_v18 = vld [vmem:[%s9206_s1 + $0x9f8] sm:$0xff]  }
 0x129   :  { %v6000_v31 = vadd.f32 %v5999_v27, %v5998_v22  ;;  %v8286_v32 = vadd.f32 %v6025_v55, %v4178_v25  ;;  %4800 = vmatmul.mubr.bf16.vlgmr.msra.gmra.mxu0 %v221_v17  ;;  %v6033_v55 = vpop.f32.mrf.mxu0  ;;  %v6968_v22 = vld [vmem:[%s9206_s1 + $0x8e8] sm:$0xff]   ;;  %v279_v25 = vpack.c.bf16 %v163_v24, %v163_v24  ;;  %v6974_v17 = vld [vmem:[%s9206_s1 + $0x8a0] sm:$0xff]  }
 0x12a   :  { %v6001_v36 = vpop.f32.mrf.mxu1  ;;  %6400 = vmatpush3.bf16.msra.mxu0 %v6947_v33  ;;  %4807 = vmatprep.mubr.bf16.mxu0 %v280_v21  ;;  %v6971_v27 = vld [vmem:[%s9206_s1 + $0x908] sm:$0xff]   ;;  %v6982_v55 = vld [vmem:[%s9206_s1 + $0x890] sm:$0xff]   ;;  %v6994_v21 = vld [vmem:[%s9206_s1 + $0x9b8] sm:$0xff]  }
 0x12b   :  { %v4181_v35 = vadd.f32 %v6000_v31, %v8168_v30  ;;  %6401 = vmatprep.subr.bf16.mxu0 %v6949_v37  ;;  %v6951_v30 = vld [vmem:[%s9206_s1 + $0x930] sm:$0xff]   ;;  %v6079_v2 = vpop.f32.mrf.mxu0  ;;  %v6973_v31 = vld [vmem:[%s9206_s1 + $0x940] sm:$0xff]   ;;  %v52_v37 = vld [vmem:[%s9207_s0 + $0x128] sm:$0xff] }
 0x12c   :  { %v6002_v41 = vpop.f32.mrf.mxu1 }
 0x12d   :  { %v8302_v42 = vadd.f32 %v8226_v62, %v4181_v35  ;;  %v6003_v43 = vadd.f32 %v6002_v41, %v6001_v36  ;;  %v103_v62 = vld [vmem:[%s9207_s0 + $0x2c0] sm:$0xff]  ;;  %v6080_v6 = vpop.f32.mrf.mxu0  ;;  %v6976_v36 = vld [vmem:[%s9206_s1 + $0x8d8] sm:$0xff]   ;;  %v226_v41 = vpack.c.bf16 %v110_v38, %v52_v37 }
 0x12e   :  { %v6004_v46 = vpop.f32.mrf.mxu1  ;;  %6402 = vmatpush3.bf16.msra.mxu0 %v6951_v30  ;;  %v219_v0 = vpack.c.bf16 %v103_v62, %v45_v61  ;;  %v6081_v8 = vadd.f32 %v6080_v6, %v6079_v2  ;;  %v6977_v30 = vld [vmem:[%s9206_s1 + $0xa78] sm:$0xff]   ;;  %v6986_v2 = vld [vmem:[%s9206_s1 + $0x888] sm:$0xff]  }
 0x12f   :  { %v4186_v48 = vadd.f32 %v6003_v43, %v8182_v40  ;;  %6403 = vmatprep.subr.bf16.mxu0 %v6953_v47  ;;  %v6956_v40 = vld [vmem:[%s9206_s1 + $0x7c0] sm:$0xff]   ;;  %v6082_v9 = vpop.f32.mrf.mxu0  ;;  %v109_v47 = vld [vmem:[%s9207_s0 + $0x2f0] sm:$0xff]  ;;  %v6987_v6 = vld [vmem:[%s9206_s1 + $0xa28] sm:$0xff]  }
 0x130   :  { %v6005_v52 = vpop.f32.mrf.mxu1  ;;  %6329 = vmatprep.subr.bf16.mxu1 %v6956_v40  ;;  %v51_v46 = vld [vmem:[%s9207_s0 + $0x120] sm:$0xff]  ;;  %v6981_v40 = vld [vmem:[%s9206_s1 + $0xa70] sm:$0xff]  }
 0x131   :  { %v8320_v54 = vadd.f32 %v6031_v49, %v4186_v48  ;;  %6330 = vmatpush3.bf16.msra.mxu1 %v6958_v57  ;;  %v6083_v12 = vpop.f32.mrf.mxu0  ;;  %4808 = vmatmul.mubr.bf16.gmra.mxu0 %v279_v25  ;;  %v6996_v25 = vld [vmem:[%s9206_s1 + $0x9f0] sm:$0xff]  }
 0x132   :  { %6404 = vmatpush3.bf16.msra.mxu0 %v6955_v53  ;;  %6371 = vmatprep.subr.bf16.mxu1 %v6960_v1  ;;  %v8370_v14 = vadd.f32 %v6083_v12, %v6082_v9  ;;  %v6990_v9 = vld [vmem:[%s9206_s1 + $0x880] sm:$0xff]   ;;  %v108_v12 = vld [vmem:[%s9207_s0 + $0x2e8] sm:$0xff] }
 0x133   :  { %6405 = vmatprep.subr.bf16.mxu0 %v6957_v56  ;;  %4895 = vmatprep.mubr.bf16.mxu0 %v226_v41  ;;  %v6085_v56 = vpop.f32.mrf.mxu0  ;;  %v7001_v41 = vld [vmem:[%s9206_s1 + $0xa48] sm:$0xff]  }
 0x134   :  { %4752 = vmatmul.mubr.bf16.vlgmr.msra.gmra.mxu1 %v219_v0 }
 0x135   :  { %6372 = vmatpush3.bf16.msra.mxu1 %v6962_v5  ;;  %4759 = vmatprep.mubr.bf16.mxu1 %v278_v19  ;;  %v6086_v61 = vpop.f32.mrf.mxu0 }
 0x136   :  { %6406 = vmatpush3.bf16.msra.mxu0 %v6959_v58  ;;  %6373 = vmatprep.subr.bf16.mxu1 %v6964_v4  ;;  %v6087_v1 = vadd.f32 %v6086_v61, %v6085_v56  ;;  %v6989_v4 = vld [vmem:[%s9206_s1 + $0xa60] sm:$0xff]  }
 0x137   :  { %6407 = vmatprep.subr.bf16.mxu0 %v6961_v3  ;;  %v6088_v3 = vpop.f32.mrf.mxu0 }
 0x138   :  { %v7012_v3 = vld [vmem:[%s9206_s1 + $0x9d0] sm:$0xff]  }
 0x139   :  { %6374 = vmatpush3.bf16.msra.mxu1 %v6966_v11  ;;  %v50_v11 = vld [vmem:[%s9207_s0 + $0x118] sm:$0xff] }
 0x13a   :  { %6408 = vmatpush3.bf16.msra.mxu0 %v6963_v7  ;;  %6375 = vmatprep.subr.bf16.mxu1 %v6968_v22  ;;  %v224_v15 = vpack.c.bf16 %v108_v12, %v50_v11  ;;  %v7016_v12 = vld [vmem:[%s9206_s1 + $0x9c8] sm:$0xff]  }
 0x13b   :  { %6409 = vmatprep.subr.bf16.mxu0 %v6965_v10  ;;  %v6991_v10 = vld [vmem:[%s9206_s1 + $0xa20] sm:$0xff]  }
 0x13c   :  { %4760 = vmatmul.mubr.bf16.gmra.mxu1 %v277_v20  ;;  %v6993_v20 = vld [vmem:[%s9206_s1 + $0xa58] sm:$0xff]  }
 0x13d   :  { %6376 = vmatpush3.bf16.msra.mxu1 %v6970_v26  ;;  %4847 = vmatprep.mubr.bf16.mxu1 %v224_v15  ;;  %v7017_v15 = vld [vmem:[%s9206_s1 + $0xb68] sm:$0xff]  }
 0x13e   :  { %6410 = vmatpush3.bf16.msra.mxu0 %v6967_v13  ;;  %6377 = vmatprep.subr.bf16.mxu1 %v6972_v28  ;;  %v49_v13 = vld [vmem:[%s9207_s0 + $0x110] sm:$0xff] }
 0x13f   :  { %6411 = vmatprep.subr.bf16.mxu0 %v6969_v23  ;;  %v6995_v23 = vld [vmem:[%s9206_s1 + $0xa18] sm:$0xff]   ;;  %v6998_v28 = vld [vmem:[%s9206_s1 + $0x9b0] sm:$0xff]  }
 0x141   :  { %6378 = vmatpush3.bf16.msra.mxu1 %v6974_v17 }
 0x142   :  { %v6051_v29 = vpop.f32.mrf.mxu1  ;;  %6412 = vmatpush3.bf16.msra.mxu0 %v6971_v27  ;;  %6379 = vmatprep.subr.bf16.mxu1 %v6976_v36  ;;  %v6997_v27 = vld [vmem:[%s9206_s1 + $0xa50] sm:$0xff]  }
 0x143   :  { %6413 = vmatprep.subr.bf16.mxu0 %v6973_v31  ;;  %v6999_v31 = vld [vmem:[%s9206_s1 + $0xa10] sm:$0xff]  }
 0x144   :  { %v6052_v33 = vpop.f32.mrf.mxu1 }
 0x145   :  { %v6053_v35 = vadd.f32 %v6052_v33, %v6051_v29  ;;  %6380 = vmatpush3.bf16.msra.mxu1 %v6978_v44  ;;  %v166_v33 = vld [vmem:[%s9207_s0 + $0x4b8] sm:$0xff]  ;;  %v7002_v44 = vld [vmem:[%s9206_s1 + $0x9a8] sm:$0xff]  }
 0x146   :  { %v6054_v39 = vpop.f32.mrf.mxu1  ;;  %6414 = vmatpush3.bf16.msra.mxu0 %v6975_v34  ;;  %6381 = vmatprep.subr.bf16.mxu1 %v6980_v51  ;;  %v165_v34 = vld [vmem:[%s9207_s0 + $0x4b0] sm:$0xff]  ;;  %v282_v36 = vpack.c.bf16 %v166_v33, %v166_v33  ;;  %v7007_v51 = vld [vmem:[%s9206_s1 + $0xa00] sm:$0xff]  }
 0x147   :  { %v4274_v43 = vadd.f32 %v6053_v35, %v8286_v32  ;;  %6455 = vmatprep.subr.bf16.mxu0 %v6977_v30  ;;  %v225_v32 = vpack.c.bf16 %v109_v47, %v51_v46  ;;  %v168_v35 = vld [vmem:[%s9207_s0 + $0x4c8] sm:$0xff]  ;;  %v281_v37 = vpack.c.bf16 %v165_v34, %v165_v34  ;;  %v167_v30 = vld [vmem:[%s9207_s0 + $0x4c0] sm:$0xff] }
 0x148   :  { %v6055_v45 = vpop.f32.mrf.mxu1  ;;  %v284_v38 = vpack.c.bf16 %v168_v35, %v168_v35  ;;  %v7004_v46 = vld [vmem:[%s9206_s1 + $0x9e0] sm:$0xff]   ;;  %v7024_v35 = vld [vmem:[%s9206_s1 + $0xaf8] sm:$0xff]  }
 0x149   :  { %v6056_v48 = vadd.f32 %v6055_v45, %v6054_v39  ;;  %v8430_v49 = vadd.f32 %v6081_v8, %v4274_v43  ;;  %4896 = vmatmul.mubr.bf16.vlgmr.msra.gmra.mxu0 %v225_v32  ;;  %6382 = vmatpush3.bf16.msra.mxu1 %v6982_v55  ;;  %v6089_v8 = vpop.f32.mrf.mxu0  ;;  %v7000_v39 = vld [vmem:[%s9206_s1 + $0x9e8] sm:$0xff]   ;;  %v283_v43 = vpack.c.bf16 %v167_v30, %v167_v30  ;;  %v7006_v32 = vld [vmem:[%s9206_s1 + $0x9a0] sm:$0xff]   ;;  %v114_v55 = vld [vmem:[%s9207_s0 + $0x318] sm:$0xff] }
 0x14a   :  { %v6057_v53 = vpop.f32.mrf.mxu1  ;;  %6456 = vmatpush3.bf16.msra.mxu0 %v6979_v50  ;;  %6383 = vmatprep.subr.bf16.mxu1 %v6984_v60  ;;  %v7003_v45 = vld [vmem:[%s9206_s1 + $0xa08] sm:$0xff]   ;;  %v7010_v60 = vld [vmem:[%s9206_s1 + $0x998] sm:$0xff]   ;;  %v7014_v8 = vld [vmem:[%s9206_s1 + $0x990] sm:$0xff]  }
 0x14b   :  { %v4277_v52 = vadd.f32 %v6056_v48, %v8302_v42  ;;  %6457 = vmatprep.subr.bf16.mxu0 %v6981_v40  ;;  %v6983_v42 = vld [vmem:[%s9206_s1 + $0xa30] sm:$0xff]   ;;  %v6135_v19 = vpop.f32.mrf.mxu0  ;;  %4903 = vmatprep.mubr.bf16.mxu0 %v284_v38  ;;  %v7005_v48 = vld [vmem:[%s9206_s1 + $0xa40] sm:$0xff]   ;;  %v56_v40 = vld [vmem:[%s9207_s0 + $0x148] sm:$0xff] }
 0x14c   :  { %v6058_v57 = vpop.f32.mrf.mxu1  ;;  %v7026_v38 = vld [vmem:[%s9206_s1 + $0xab8] sm:$0xff]  }
 0x14d   :  { %v8446_v58 = vadd.f32 %v8370_v14, %v4277_v52  ;;  %v6059_v59 = vadd.f32 %v6058_v57, %v6057_v53  ;;  %6384 = vmatpush3.bf16.msra.mxu1 %v6986_v2  ;;  %v107_v14 = vld [vmem:[%s9207_s0 + $0x2e0] sm:$0xff]  ;;  %v6136_v22 = vpop.f32.mrf.mxu0  ;;  %v7008_v53 = vld [vmem:[%s9206_s1 + $0x9d8] sm:$0xff]   ;;  %v230_v57 = vpack.c.bf16 %v114_v55, %v56_v40 }
 0x14e   :  { %v6060_v62 = vpop.f32.mrf.mxu1  ;;  %6458 = vmatpush3.bf16.msra.mxu0 %v6983_v42  ;;  %v223_v16 = vpack.c.bf16 %v107_v14, %v49_v13  ;;  %v6137_v24 = vadd.f32 %v6136_v22, %v6135_v19  ;;  %v7009_v42 = vld [vmem:[%s9206_s1 + $0xb78] sm:$0xff]   ;;  %v7018_v19 = vld [vmem:[%s9206_s1 + $0x988] sm:$0xff]  }
 0x14f   :  { %v4282_v0 = vadd.f32 %v6059_v59, %v8320_v54  ;;  %6459 = vmatprep.subr.bf16.mxu0 %v6985_v63  ;;  %v6988_v54 = vld [vmem:[%s9206_s1 + $0x8c0] sm:$0xff]   ;;  %v6138_v26 = vpop.f32.mrf.mxu0  ;;  %v113_v63 = vld [vmem:[%s9207_s0 + $0x310] sm:$0xff]  ;;  %v7011_v2 = vld [vmem:[%s9206_s1 + $0xb38] sm:$0xff]  }
 0x150   :  { %v6061_v5 = vpop.f32.mrf.mxu1  ;;  %6385 = vmatprep.subr.bf16.mxu1 %v6988_v54  ;;  %v55_v62 = vld [vmem:[%s9207_s0 + $0x140] sm:$0xff]  ;;  %v7013_v54 = vld [vmem:[%s9206_s1 + $0xb70] sm:$0xff]   ;;  %v7019_v22 = vld [vmem:[%s9206_s1 + $0xb28] sm:$0xff]  }
 0x151   :  { %v8464_v7 = vadd.f32 %v6087_v1, %v4282_v0  ;;  %6386 = vmatpush3.bf16.msra.mxu1 %v6990_v9  ;;  %v6139_v29 = vpop.f32.mrf.mxu0  ;;  %4904 = vmatmul.mubr.bf16.gmra.mxu0 %v283_v43  ;;  %v7028_v43 = vld [vmem:[%s9206_s1 + $0xaf0] sm:$0xff]  }
 0x152   :  { %6460 = vmatpush3.bf16.msra.mxu0 %v6987_v6  ;;  %6427 = vmatprep.subr.bf16.mxu1 %v6992_v18  ;;  %v8514_v17 = vadd.f32 %v6139_v29, %v6138_v26  ;;  %v7022_v26 = vld [vmem:[%s9206_s1 + $0x980] sm:$0xff]   ;;  %v112_v29 = vld [vmem:[%s9207_s0 + $0x308] sm:$0xff] }
 0x153   :  { %6461 = vmatprep.subr.bf16.mxu0 %v6989_v4  ;;  %4991 = vmatprep.mubr.bf16.mxu0 %v230_v57  ;;  %v6141_v4 = vpop.f32.mrf.mxu0  ;;  %v7033_v57 = vld [vmem:[%s9206_s1 + $0xb48] sm:$0xff]  }
 0x154   :  { %4848 = vmatmul.mubr.bf16.vlgmr.msra.gmra.mxu1 %v223_v16 }
 0x155   :  { %6428 = vmatpush3.bf16.msra.mxu1 %v6994_v21  ;;  %4855 = vmatprep.mubr.bf16.mxu1 %v282_v36  ;;  %v6142_v13 = vpop.f32.mrf.mxu0 }
 0x156   :  { %6462 = vmatpush3.bf16.msra.mxu0 %v6991_v10  ;;  %6429 = vmatprep.subr.bf16.mxu1 %v6996_v25  ;;  %v6143_v18 = vadd.f32 %v6142_v13, %v6141_v4  ;;  %v7021_v25 = vld [vmem:[%s9206_s1 + $0xb60] sm:$0xff]  }
 0x157   :  { %6463 = vmatprep.subr.bf16.mxu0 %v6993_v20  ;;  %v6144_v20 = vpop.f32.mrf.mxu0 }
 0x158   :  { %v7044_v20 = vld [vmem:[%s9206_s1 + $0xad0] sm:$0xff]  }
 0x159   :  { %6430 = vmatpush3.bf16.msra.mxu1 %v6998_v28  ;;  %v54_v28 = vld [vmem:[%s9207_s0 + $0x138] sm:$0xff] }
 0x15a   :  { %6464 = vmatpush3.bf16.msra.mxu0 %v6995_v23  ;;  %6431 = vmatprep.subr.bf16.mxu1 %v7000_v39  ;;  %v228_v33 = vpack.c.bf16 %v112_v29, %v54_v28  ;;  %v7048_v29 = vld [vmem:[%s9206_s1 + $0xac8] sm:$0xff]  }
 0x15b   :  { %6465 = vmatprep.subr.bf16.mxu0 %v6997_v27  ;;  %v7023_v27 = vld [vmem:[%s9206_s1 + $0xb20] sm:$0xff]  }
 0x15c   :  { %4856 = vmatmul.mubr.bf16.gmra.mxu1 %v281_v37  ;;  %v7025_v37 = vld [vmem:[%s9206_s1 + $0xb58] sm:$0xff]  }
 0x15d   :  { %6432 = vmatpush3.bf16.msra.mxu1 %v7002_v44  ;;  %4943 = vmatprep.mubr.bf16.mxu1 %v228_v33  ;;  %v7049_v33 = vld [vmem:[%s9206_s1 + $0xc68] sm:$0xff]  }
 0x15e   :  { %6466 = vmatpush3.bf16.msra.mxu0 %v6999_v31  ;;  %6433 = vmatprep.subr.bf16.mxu1 %v7004_v46  ;;  %v53_v31 = vld [vmem:[%s9207_s0 + $0x130] sm:$0xff] }
 0x15f   :  { %6467 = vmatprep.subr.bf16.mxu0 %v7001_v41  ;;  %v7027_v41 = vld [vmem:[%s9206_s1 + $0xb18] sm:$0xff]   ;;  %v7030_v46 = vld [vmem:[%s9206_s1 + $0xab0] sm:$0xff]  }
 0x161   :  { %6434 = vmatpush3.bf16.msra.mxu1 %v7006_v32 }
 0x162   :  { %v6107_v47 = vpop.f32.mrf.mxu1  ;;  %6468 = vmatpush3.bf16.msra.mxu0 %v7003_v45  ;;  %6435 = vmatprep.subr.bf16.mxu1 %v7008_v53  ;;  %v7029_v45 = vld [vmem:[%s9206_s1 + $0xb50] sm:$0xff]  }
 0x163   :  { %6469 = vmatprep.subr.bf16.mxu0 %v7005_v48  ;;  %v7031_v48 = vld [vmem:[%s9206_s1 + $0xb10] sm:$0xff]  }
 0x164   :  { %v6108_v50 = vpop.f32.mrf.mxu1 }
 0x165   :  { %v6109_v52 = vadd.f32 %v6108_v50, %v6107_v47  ;;  %6436 = vmatpush3.bf16.msra.mxu1 %v7010_v60  ;;  %v170_v50 = vld [vmem:[%s9207_s0 + $0x4d8] sm:$0xff]  ;;  %v7034_v60 = vld [vmem:[%s9206_s1 + $0xaa8] sm:$0xff]  }
 0x166   :  { %v6110_v56 = vpop.f32.mrf.mxu1  ;;  %6470 = vmatpush3.bf16.msra.mxu0 %v7007_v51  ;;  %6437 = vmatprep.subr.bf16.mxu1 %v7012_v3  ;;  %v169_v51 = vld [vmem:[%s9207_s0 + $0x4d0] sm:$0xff]  ;;  %v286_v53 = vpack.c.bf16 %v170_v50, %v170_v50  ;;  %v7039_v3 = vld [vmem:[%s9206_s1 + $0xb00] sm:$0xff]  }
 0x167   :  { %v4370_v59 = vadd.f32 %v6109_v52, %v8430_v49  ;;  %6511 = vmatprep.subr.bf16.mxu0 %v7009_v42  ;;  %v229_v49 = vpack.c.bf16 %v113_v63, %v55_v62  ;;  %v172_v52 = vld [vmem:[%s9207_s0 + $0x4e8] sm:$0xff]  ;;  %v285_v40 = vpack.c.bf16 %v169_v51, %v169_v51  ;;  %v171_v42 = vld [vmem:[%s9207_s0 + $0x4e0] sm:$0xff] }
 0x168   :  { %v6111_v61 = vpop.f32.mrf.mxu1  ;;  %v288_v55 = vpack.c.bf16 %v172_v52, %v172_v52  ;;  %v7036_v62 = vld [vmem:[%s9206_s1 + $0xae0] sm:$0xff]   ;;  %v7056_v52 = vld [vmem:[%s9206_s1 + $0xbf8] sm:$0xff]  }
 0x169   :  { %v6112_v0 = vadd.f32 %v6111_v61, %v6110_v56  ;;  %v8574_v1 = vadd.f32 %v6137_v24, %v4370_v59  ;;  %4992 = vmatmul.mubr.bf16.vlgmr.msra.gmra.mxu0 %v229_v49  ;;  %6438 = vmatpush3.bf16.msra.mxu1 %v7014_v8  ;;  %v6145_v24 = vpop.f32.mrf.mxu0  ;;  %v7032_v56 = vld [vmem:[%s9206_s1 + $0xae8] sm:$0xff]   ;;  %v287_v59 = vpack.c.bf16 %v171_v42, %v171_v42  ;;  %v7038_v49 = vld [vmem:[%s9206_s1 + $0xaa0] sm:$0xff]   ;;  %v118_v8 = vld [vmem:[%s9207_s0 + $0x338] sm:$0xff] }
 0x16a   :  { %v6113_v6 = vpop.f32.mrf.mxu1  ;;  %6512 = vmatpush3.bf16.msra.mxu0 %v7011_v2  ;;  %6439 = vmatprep.subr.bf16.mxu1 %v7016_v12  ;;  %v7035_v61 = vld [vmem:[%s9206_s1 + $0xb08] sm:$0xff]   ;;  %v7042_v12 = vld [vmem:[%s9206_s1 + $0xa98] sm:$0xff]   ;;  %v7046_v24 = vld [vmem:[%s9206_s1 + $0xa90] sm:$0xff]  }
 0x16b   :  { %v4373_v5 = vadd.f32 %v6112_v0, %v8446_v58  ;;  %6513 = vmatprep.subr.bf16.mxu0 %v7013_v54  ;;  %v7015_v58 = vld [vmem:[%s9206_s1 + $0xb30] sm:$0xff]   ;;  %v6191_v36 = vpop.f32.mrf.mxu0  ;;  %4999 = vmatprep.mubr.bf16.mxu0 %v288_v55  ;;  %v7037_v0 = vld [vmem:[%s9206_s1 + $0xb40] sm:$0xff]   ;;  %v60_v54 = vld [vmem:[%s9207_s0 + $0x168] sm:$0xff] }
 0x16c   :  { %v6114_v9 = vpop.f32.mrf.mxu1  ;;  %v7058_v55 = vld [vmem:[%s9206_s1 + $0xbb8] sm:$0xff]  }
 0x16d   :  { %v8590_v10 = vadd.f32 %v8514_v17, %v4373_v5  ;;  %v6115_v11 = vadd.f32 %v6114_v9, %v6113_v6  ;;  %6440 = vmatpush3.bf16.msra.mxu1 %v7018_v19  ;;  %v111_v17 = vld [vmem:[%s9207_s0 + $0x300] sm:$0xff]  ;;  %v6192_v39 = vpop.f32.mrf.mxu0  ;;  %v7040_v6 = vld [vmem:[%s9206_s1 + $0xad8] sm:$0xff]   ;;  %v234_v9 = vpack.c.bf16 %v118_v8, %v60_v54 }
 0x16e   :  { %v6116_v14 = vpop.f32.mrf.mxu1  ;;  %6514 = vmatpush3.bf16.msra.mxu0 %v7015_v58  ;;  %v227_v34 = vpack.c.bf16 %v111_v17, %v53_v31  ;;  %v6193_v30 = vadd.f32 %v6192_v39, %v6191_v36  ;;  %v7041_v58 = vld [vmem:[%s9206_s1 + $0xc78] sm:$0xff]   ;;  %v7050_v36 = vld [vmem:[%s9206_s1 + $0xa88] sm:$0xff]  }
 0x16f   :  { %v4378_v16 = vadd.f32 %v6115_v11, %v8464_v7  ;;  %6515 = vmatprep.subr.bf16.mxu0 %v7017_v15  ;;  %v7020_v7 = vld [vmem:[%s9206_s1 + $0x9c0] sm:$0xff]   ;;  %v6194_v44 = vpop.f32.mrf.mxu0  ;;  %v117_v15 = vld [vmem:[%s9207_s0 + $0x330] sm:$0xff]  ;;  %v7043_v19 = vld [vmem:[%s9206_s1 + $0xc38] sm:$0xff]  }
 0x170   :  { %v6117_v21 = vpop.f32.mrf.mxu1  ;;  %6441 = vmatprep.subr.bf16.mxu1 %v7020_v7  ;;  %v59_v14 = vld [vmem:[%s9207_s0 + $0x160] sm:$0xff]  ;;  %v7045_v7 = vld [vmem:[%s9206_s1 + $0xc70] sm:$0xff]   ;;  %v7051_v39 = vld [vmem:[%s9206_s1 + $0xc28] sm:$0xff]  }
 0x171   :  { %v8608_v23 = vadd.f32 %v6143_v18, %v4378_v16  ;;  %6442 = vmatpush3.bf16.msra.mxu1 %v7022_v26  ;;  %v6195_v47 = vpop.f32.mrf.mxu0  ;;  %5000 = vmatmul.mubr.bf16.gmra.mxu0 %v287_v59  ;;  %v7060_v59 = vld [vmem:[%s9206_s1 + $0xbf0] sm:$0xff]  }
 0x172   :  { %6516 = vmatpush3.bf16.msra.mxu0 %v7019_v22  ;;  %6483 = vmatprep.subr.bf16.mxu1 %v7024_v35  ;;  %v8658_v32 = vadd.f32 %v6195_v47, %v6194_v44  ;;  %v7054_v44 = vld [vmem:[%s9206_s1 + $0xa80] sm:$0xff]   ;;  %v116_v47 = vld [vmem:[%s9207_s0 + $0x328] sm:$0xff] }
 0x173   :  { %6517 = vmatprep.subr.bf16.mxu0 %v7021_v25  ;;  %5087 = vmatprep.mubr.bf16.mxu0 %v234_v9  ;;  %v6197_v25 = vpop.f32.mrf.mxu0  ;;  %v7065_v9 = vld [vmem:[%s9206_s1 + $0xc48] sm:$0xff]  }
 0x174   :  { %4944 = vmatmul.mubr.bf16.vlgmr.msra.gmra.mxu1 %v227_v34 }
 0x175   :  { %6484 = vmatpush3.bf16.msra.mxu1 %v7026_v38  ;;  %4951 = vmatprep.mubr.bf16.mxu1 %v286_v53  ;;  %v6198_v31 = vpop.f32.mrf.mxu0 }
 0x176   :  { %6518 = vmatpush3.bf16.msra.mxu0 %v7023_v27  ;;  %6485 = vmatprep.subr.bf16.mxu1 %v7028_v43  ;;  %v6199_v35 = vadd.f32 %v6198_v31, %v6197_v25  ;;  %v7053_v43 = vld [vmem:[%s9206_s1 + $0xc60] sm:$0xff]  }
 0x177   :  { %6519 = vmatprep.subr.bf16.mxu0 %v7025_v37  ;;  %v6200_v37 = vpop.f32.mrf.mxu0 }
 0x178   :  { %v7076_v37 = vld [vmem:[%s9206_s1 + $0xbd0] sm:$0xff]  }
 0x179   :  { %6486 = vmatpush3.bf16.msra.mxu1 %v7030_v46  ;;  %v58_v46 = vld [vmem:[%s9207_s0 + $0x158] sm:$0xff] }
 0x17a   :  { %6520 = vmatpush3.bf16.msra.mxu0 %v7027_v41  ;;  %6487 = vmatprep.subr.bf16.mxu1 %v7032_v56  ;;  %v232_v50 = vpack.c.bf16 %v116_v47, %v58_v46  ;;  %v7080_v46 = vld [vmem:[%s9206_s1 + $0xbc8] sm:$0xff]  }
 0x17b   :  { %6521 = vmatprep.subr.bf16.mxu0 %v7029_v45  ;;  %v7055_v45 = vld [vmem:[%s9206_s1 + $0xc20] sm:$0xff]  }
 0x17c   :  { %4952 = vmatmul.mubr.bf16.gmra.mxu1 %v285_v40  ;;  %v7057_v40 = vld [vmem:[%s9206_s1 + $0xc58] sm:$0xff]  }
 0x17d   :  { %6488 = vmatpush3.bf16.msra.mxu1 %v7034_v60  ;;  %5039 = vmatprep.mubr.bf16.mxu1 %v232_v50 }
 0x17e   :  { %6522 = vmatpush3.bf16.msra.mxu0 %v7031_v48  ;;  %6489 = vmatprep.subr.bf16.mxu1 %v7036_v62  ;;  %v57_v48 = vld [vmem:[%s9207_s0 + $0x150] sm:$0xff] }
 0x17f   :  { %6523 = vmatprep.subr.bf16.mxu0 %v7033_v57  ;;  %v7059_v57 = vld [vmem:[%s9206_s1 + $0xc18] sm:$0xff]   ;;  %v7062_v62 = vld [vmem:[%s9206_s1 + $0xbb0] sm:$0xff]  }
 0x181   :  { %6490 = vmatpush3.bf16.msra.mxu1 %v7038_v49 }
 0x182   :  { %v6163_v63 = vpop.f32.mrf.mxu1  ;;  %6524 = vmatpush3.bf16.msra.mxu0 %v7035_v61  ;;  %6491 = vmatprep.subr.bf16.mxu1 %v7040_v6  ;;  %v7061_v61 = vld [vmem:[%s9206_s1 + $0xc50] sm:$0xff]  }
 0x183   :  { %6525 = vmatprep.subr.bf16.mxu0 %v7037_v0  ;;  %v7063_v0 = vld [vmem:[%s9206_s1 + $0xc10] sm:$0xff]  }
 0x184   :  { %v6164_v2 = vpop.f32.mrf.mxu1 }
 0x185   :  { %v6165_v5 = vadd.f32 %v6164_v2, %v6163_v63  ;;  %6492 = vmatpush3.bf16.msra.mxu1 %v7042_v12  ;;  %v174_v2 = vld [vmem:[%s9207_s0 + $0x4f8] sm:$0xff]  ;;  %v7066_v12 = vld [vmem:[%s9206_s1 + $0xba8] sm:$0xff]  }
 0x186   :  { %v6166_v4 = vpop.f32.mrf.mxu1  ;;  %6526 = vmatpush3.bf16.msra.mxu0 %v7039_v3  ;;  %6493 = vmatprep.subr.bf16.mxu1 %v7044_v20  ;;  %v173_v3 = vld [vmem:[%s9207_s0 + $0x4f0] sm:$0xff]  ;;  %v290_v6 = vpack.c.bf16 %v174_v2, %v174_v2  ;;  %v7071_v20 = vld [vmem:[%s9206_s1 + $0xc00] sm:$0xff]  }
 0x187   :  { %v4466_v11 = vadd.f32 %v6165_v5, %v8574_v1  ;;  %6567 = vmatprep.subr.bf16.mxu0 %v7041_v58  ;;  %v233_v1 = vpack.c.bf16 %v117_v15, %v59_v14  ;;  %v176_v5 = vld [vmem:[%s9207_s0 + $0x508] sm:$0xff]  ;;  %v289_v54 = vpack.c.bf16 %v173_v3, %v173_v3  ;;  %v175_v58 = vld [vmem:[%s9207_s0 + $0x500] sm:$0xff] }
 0x188   :  { %v6167_v13 = vpop.f32.mrf.mxu1  ;;  %v292_v8 = vpack.c.bf16 %v176_v5, %v176_v5  ;;  %v7068_v14 = vld [vmem:[%s9206_s1 + $0xbe0] sm:$0xff]   ;;  %v7088_v5 = vld [vmem:[%s9206_s1 + $0xcf8] sm:$0xff]  }
 0x189   :  { %v6168_v16 = vadd.f32 %v6167_v13, %v6166_v4  ;;  %v8718_v18 = vadd.f32 %v6193_v30, %v4466_v11  ;;  %5088 = vmatmul.mubr.bf16.vlgmr.msra.gmra.mxu0 %v233_v1  ;;  %6494 = vmatpush3.bf16.msra.mxu1 %v7046_v24  ;;  %v6201_v30 = vpop.f32.mrf.mxu0  ;;  %v7064_v4 = vld [vmem:[%s9206_s1 + $0xbe8] sm:$0xff]   ;;  %v291_v11 = vpack.c.bf16 %v175_v58, %v175_v58  ;;  %v7070_v1 = vld [vmem:[%s9206_s1 + $0xba0] sm:$0xff]   ;;  %v122_v24 = vld [vmem:[%s9207_s0 + $0x358] sm:$0xff] }
 0x18a   :  { %v6169_v22 = vpop.f32.mrf.mxu1  ;;  %6568 = vmatpush3.bf16.msra.mxu0 %v7043_v19  ;;  %6495 = vmatprep.subr.bf16.mxu1 %v7048_v29  ;;  %v7067_v13 = vld [vmem:[%s9206_s1 + $0xc08] sm:$0xff]   ;;  %v7074_v29 = vld [vmem:[%s9206_s1 + $0xb98] sm:$0xff]   ;;  %v7078_v30 = vld [vmem:[%s9206_s1 + $0xb90] sm:$0xff]  }
 0x18b   :  { %v4469_v21 = vadd.f32 %v6168_v16, %v8590_v10  ;;  %6569 = vmatprep.subr.bf16.mxu0 %v7045_v7  ;;  %v7047_v10 = vld [vmem:[%s9206_s1 + $0xc30] sm:$0xff]   ;;  %v6247_v53 = vpop.f32.mrf.mxu0  ;;  %5095 = vmatprep.mubr.bf16.mxu0 %v292_v8  ;;  %v7069_v16 = vld [vmem:[%s9206_s1 + $0xc40] sm:$0xff]   ;;  %v64_v7 = vld [vmem:[%s9207_s0 + $0x188] sm:$0xff] }
 0x18c   :  { %v6170_v26 = vpop.f32.mrf.mxu1  ;;  %v7090_v8 = vld [vmem:[%s9206_s1 + $0xcb8] sm:$0xff]  }
 0x18d   :  { %v8734_v27 = vadd.f32 %v8658_v32, %v4469_v21  ;;  %v6171_v28 = vadd.f32 %v6170_v26, %v6169_v22  ;;  %6496 = vmatpush3.bf16.msra.mxu1 %v7050_v36  ;;  %v115_v32 = vld [vmem:[%s9207_s0 + $0x320] sm:$0xff]  ;;  %v6248_v56 = vpop.f32.mrf.mxu0  ;;  %v7072_v22 = vld [vmem:[%s9206_s1 + $0xbd8] sm:$0xff]   ;;  %v238_v26 = vpack.c.bf16 %v122_v24, %v64_v7 }
 0x18e   :  { %v6172_v17 = vpop.f32.mrf.mxu1  ;;  %6570 = vmatpush3.bf16.msra.mxu0 %v7047_v10  ;;  %v231_v51 = vpack.c.bf16 %v115_v32, %v57_v48  ;;  %v6249_v42 = vadd.f32 %v6248_v56, %v6247_v53  ;;  %v7073_v10 = vld [vmem:[%s9206_s1 + $0xd78] sm:$0xff]   ;;  %v7081_v48 = vld [vmem:[%s9206_s1 + $0xd68] sm:$0xff]  }
 0x18f   :  { %v4474_v34 = vadd.f32 %v6171_v28, %v8608_v23  ;;  %6571 = vmatprep.subr.bf16.mxu0 %v7049_v33  ;;  %v7052_v23 = vld [vmem:[%s9206_s1 + $0xac0] sm:$0xff]   ;;  %v6250_v60 = vpop.f32.mrf.mxu0  ;;  %v121_v33 = vld [vmem:[%s9207_s0 + $0x350] sm:$0xff]  ;;  %v7075_v36 = vld [vmem:[%s9206_s1 + $0xd38] sm:$0xff]  }
 0x190   :  { %v6173_v38 = vpop.f32.mrf.mxu1  ;;  %6497 = vmatprep.subr.bf16.mxu1 %v7052_v23  ;;  %v63_v17 = vld [vmem:[%s9207_s0 + $0x180] sm:$0xff] }
 0x191   :  { %v8752_v41 = vadd.f32 %v6199_v35, %v4474_v34  ;;  %6498 = vmatpush3.bf16.msra.mxu1 %v7054_v44  ;;  %v6251_v63 = vpop.f32.mrf.mxu0  ;;  %5096 = vmatmul.mubr.bf16.gmra.mxu0 %v291_v11  ;;  %v7079_v44 = vld [vmem:[%s9206_s1 + $0xd30] sm:$0xff]  }
 0x192   :  { %6572 = vmatpush3.bf16.msra.mxu0 %v7051_v39  ;;  %6539 = vmatprep.subr.bf16.mxu1 %v7056_v52  ;;  %v6252_v49 = vadd.f32 %v6251_v63, %v6250_v60  ;;  %v7077_v39 = vld [vmem:[%s9206_s1 + $0xd70] sm:$0xff]   ;;  %v7086_v60 = vld [vmem:[%s9206_s1 + $0xb80] sm:$0xff]   ;;  %v120_v63 = vld [vmem:[%s9207_s0 + $0x348] sm:$0xff] }
 0x193   :  { %6573 = vmatprep.subr.bf16.mxu0 %v7053_v43  ;;  %5183 = vmatprep.mubr.bf16.mxu0 %v238_v26  ;;  %v7092_v11 = vld [vmem:[%s9206_s1 + $0xcf0] sm:$0xff]   ;;  %v7097_v26 = vld [vmem:[%s9206_s1 + $0xd48] sm:$0xff]  }
 0x194   :  { %5040 = vmatmul.mubr.bf16.vlgmr.msra.gmra.mxu1 %v231_v51  ;;  %v7082_v51 = vld [vmem:[%s9206_s1 + $0xb88] sm:$0xff]  }
 0x195   :  { %6540 = vmatpush3.bf16.msra.mxu1 %v7058_v55  ;;  %5047 = vmatprep.mubr.bf16.mxu1 %v290_v6 }
 0x196   :  { %6574 = vmatpush3.bf16.msra.mxu0 %v7055_v45  ;;  %6541 = vmatprep.subr.bf16.mxu1 %v7060_v59  ;;  %v7085_v59 = vld [vmem:[%s9206_s1 + $0xd60] sm:$0xff]  }
 0x197   :  { %6575 = vmatprep.subr.bf16.mxu0 %v7057_v40  ;;  %v7083_v40 = vld [vmem:[%s9206_s1 + $0xd28] sm:$0xff]  }
 0x199   :  { %6542 = vmatpush3.bf16.msra.mxu1 %v7062_v62  ;;  %v62_v62 = vld [vmem:[%s9207_s0 + $0x178] sm:$0xff] }
 0x19a   :  { %6576 = vmatpush3.bf16.msra.mxu0 %v7059_v57  ;;  %6543 = vmatprep.subr.bf16.mxu1 %v7064_v4  ;;  %v7084_v57 = vld [vmem:[%s9206_s1 + $0xbc0] sm:$0xff]   ;;  %v236_v2 = vpack.c.bf16 %v120_v63, %v62_v62 }
 0x19b   :  { %6577 = vmatprep.subr.bf16.mxu0 %v7061_v61  ;;  %v7087_v61 = vld [vmem:[%s9206_s1 + $0xd20] sm:$0xff]  }
 0x19c   :  { %5048 = vmatmul.mubr.bf16.gmra.mxu1 %v289_v54  ;;  %v7089_v54 = vld [vmem:[%s9206_s1 + $0xd58] sm:$0xff]  }
 0x19d   :  { %6544 = vmatpush3.bf16.msra.mxu1 %v7066_v12  ;;  %5135 = vmatprep.mubr.bf16.mxu1 %v236_v2 }
 0x19e   :  { %6578 = vmatpush3.bf16.msra.mxu0 %v7063_v0  ;;  %6545 = vmatprep.subr.bf16.mxu1 %v7068_v14  ;;  %v61_v0 = vld [vmem:[%s9207_s0 + $0x170] sm:$0xff] }
 0x19f   :  { %6579 = vmatprep.subr.bf16.mxu0 %v7065_v9  ;;  %v7091_v9 = vld [vmem:[%s9206_s1 + $0xd18] sm:$0xff]   ;;  %v7094_v14 = vld [vmem:[%s9206_s1 + $0xcb0] sm:$0xff]  }
 0x1a1   :  { %6546 = vmatpush3.bf16.msra.mxu1 %v7070_v1 }
 0x1a2   :  { %v6219_v15 = vpop.f32.mrf.mxu1  ;;  %6580 = vmatpush3.bf16.msra.mxu0 %v7067_v13  ;;  %6547 = vmatprep.subr.bf16.mxu1 %v7072_v22  ;;  %v7093_v13 = vld [vmem:[%s9206_s1 + $0xd50] sm:$0xff]  }
 0x1a3   :  { %6581 = vmatprep.subr.bf16.mxu0 %v7069_v16  ;;  %v7095_v16 = vld [vmem:[%s9206_s1 + $0xd10] sm:$0xff]  }
 0x1a4   :  { %v6220_v19 = vpop.f32.mrf.mxu1 }
 0x1a5   :  { %v6221_v21 = vadd.f32 %v6220_v19, %v6219_v15  ;;  %6548 = vmatpush3.bf16.msra.mxu1 %v7074_v29  ;;  %v178_v19 = vld [vmem:[%s9207_s0 + $0x518] sm:$0xff]  ;;  %v7098_v29 = vld [vmem:[%s9206_s1 + $0xca8] sm:$0xff]  }
 0x1a6   :  { %v6222_v25 = vpop.f32.mrf.mxu1  ;;  %6582 = vmatpush3.bf16.msra.mxu0 %v7071_v20  ;;  %6549 = vmatprep.subr.bf16.mxu1 %v7076_v37  ;;  %v177_v20 = vld [vmem:[%s9207_s0 + $0x510] sm:$0xff]  ;;  %v294_v22 = vpack.c.bf16 %v178_v19, %v178_v19  ;;  %v7117_v19 = vld [vmem:[%s9206_s1 + $0xdb8] sm:$0xff]  }
 0x1a7   :  { %v4562_v28 = vadd.f32 %v6221_v21, %v8718_v18  ;;  %6623 = vmatprep.subr.bf16.mxu0 %v7073_v10  ;;  %v237_v18 = vpack.c.bf16 %v121_v33, %v63_v17  ;;  %v180_v21 = vld [vmem:[%s9207_s0 + $0x528] sm:$0xff]  ;;  %v293_v7 = vpack.c.bf16 %v177_v20, %v177_v20  ;;  %v179_v10 = vld [vmem:[%s9207_s0 + $0x520] sm:$0xff]  ;;  %v7119_v20 = vld [vmem:[%s9206_s1 + $0xdf0] sm:$0xff]  }
 0x1a8   :  { %v6223_v31 = vpop.f32.mrf.mxu1  ;;  %v296_v24 = vpack.c.bf16 %v180_v21, %v180_v21  ;;  %v7100_v17 = vld [vmem:[%s9206_s1 + $0xce0] sm:$0xff]   ;;  %v7118_v21 = vld [vmem:[%s9206_s1 + $0xe18] sm:$0xff]  }
 0x1a9   :  { %v6224_v34 = vadd.f32 %v6223_v31, %v6222_v25  ;;  %v8860_v35 = vadd.f32 %v6249_v42, %v4562_v28  ;;  %5184 = vmatmul.mubr.bf16.vlgmr.msra.gmra.mxu0 %v237_v18  ;;  %6550 = vmatpush3.bf16.msra.mxu1 %v7078_v30  ;;  %v7096_v25 = vld [vmem:[%s9206_s1 + $0xce8] sm:$0xff]   ;;  %v295_v28 = vpack.c.bf16 %v179_v10, %v179_v10  ;;  %v7101_v33 = vld [vmem:[%s9206_s1 + $0xd40] sm:$0xff]  }
 0x1aa   :  { %v6225_v23 = vpop.f32.mrf.mxu1  ;;  %6624 = vmatpush3.bf16.msra.mxu0 %v7075_v36  ;;  %6551 = vmatprep.subr.bf16.mxu1 %v7080_v46  ;;  %v7099_v31 = vld [vmem:[%s9206_s1 + $0xd08] sm:$0xff]   ;;  %v7102_v18 = vld [vmem:[%s9206_s1 + $0xca0] sm:$0xff]   ;;  %v7152_v46 = vmov 0  }
 0x1ab   :  { %v4565_v38 = vadd.f32 %v6224_v34, %v8734_v27  ;;  %6625 = vmatprep.subr.bf16.mxu0 %v7077_v39  ;;  %v6253_v27 = vpop.f32.mrf.mxu0  ;;  %5191 = vmatprep.mubr.bf16.mxu0 %v296_v24  ;;  %v7103_v36 = vld [vmem:[%s9206_s1 + $0xd00] sm:$0xff]   ;;  %v68_v39 = vld [vmem:[%s9207_s0 + $0x1a8] sm:$0xff]  ;;  %v182_v24 = vld [vmem:[%s9207_s0 + $0x538] sm:$0xff] }
 0x1ac   :  { %v6226_v45 = vpop.f32.mrf.mxu1  ;;  %v298_v10 = vpack.c.bf16 %v182_v24, %v182_v24 }
 0x1ad   :  { %v8875_v43 = vadd.f32 %v6252_v49, %v4565_v38  ;;  %v6227_v47 = vadd.f32 %v6226_v45, %v6225_v23  ;;  %v6254_v32 = vpop.f32.mrf.mxu0  ;;  %6552 = vmatpush3.bf16.msra.mxu1 %v7082_v51  ;;  %v119_v49 = vld [vmem:[%s9207_s0 + $0x340] sm:$0xff]  ;;  %v7104_v38 = vld [vmem:[%s9206_s1 + $0xcd8] sm:$0xff]  }
 0x1ae   :  { %v6228_v50 = vpop.f32.mrf.mxu1  ;;  %6626 = vmatpush3.bf16.msra.mxu0 %v7079_v44  ;;  %v6255_v53 = vadd.f32 %v6254_v32, %v6253_v27  ;;  %6553 = vmatprep.subr.bf16.mxu1 %v7084_v57  ;;  %v235_v3 = vpack.c.bf16 %v119_v49, %v61_v0  ;;  %v126_v23 = vld [vmem:[%s9207_s0 + $0x378] sm:$0xff]  ;;  %v7113_v49 = vld [vmem:[%s9206_s1 + $0xcc0] sm:$0xff]  }
 0x1af   :  { %v4570_v52 = vadd.f32 %v6227_v47, %v8752_v41  ;;  %6627 = vmatprep.subr.bf16.mxu0 %v7081_v48  ;;  %v6256_v55 = vpop.f32.mrf.mxu0  ;;  %v242_v44 = vpack.c.bf16 %v126_v23, %v68_v39  ;;  %v7105_v27 = vld [vmem:[%s9206_s1 + $0xc98] sm:$0xff]   ;;  %v67_v47 = vld [vmem:[%s9207_s0 + $0x1a0] sm:$0xff]  ;;  %v125_v48 = vld [vmem:[%s9207_s0 + $0x370] sm:$0xff] }
 0x1b0   :  { %v6229_v56 = vpop.f32.mrf.mxu1  ;;  %v241_v50 = vpack.c.bf16 %v125_v48, %v67_v47  ;;  %v7106_v51 = vld [vmem:[%s9206_s1 + $0xe38] sm:$0xff]   ;;  %v7125_v23 = vld [vmem:[%s9206_s1 + $0xde0] sm:$0xff]  }
 0x1b1   :  { %v8896_v42 = vadd.f32 %v6255_v53, %v4570_v52  ;;  %v6257_v41 = vpop.f32.mrf.mxu0  ;;  %6554 = vmatpush3.bf16.msra.mxu1 %v7086_v60  ;;  %5192 = vmatmul.mubr.bf16.gmra.mxu0 %v295_v28  ;;  %v7107_v53 = vld [vmem:[%s9206_s1 + $0xcd0] sm:$0xff]   ;;  %v7111_v60 = vld [vmem:[%s9206_s1 + $0xc88] sm:$0xff]   ;;  %v7127_v47 = vld [vmem:[%s9206_s1 + $0xe00] sm:$0xff]  }
 0x1b2   :  { %6628 = vmatpush3.bf16.msra.mxu0 %v7083_v40  ;;  %6595 = vmatprep.subr.bf16.mxu1 %v7088_v5  ;;  %v7109_v56 = vld [vmem:[%s9206_s1 + $0xe30] sm:$0xff]   ;;  %v7110_v41 = vld [vmem:[%s9206_s1 + $0xcc8] sm:$0xff]   ;;  %v7114_v5 = vld [vmem:[%s9206_s1 + $0xc80] sm:$0xff]  }
 0x1b3   :  { %6629 = vmatprep.subr.bf16.mxu0 %v7085_v59  ;;  %v6303_v6 = vpop.f32.mrf.mxu0  ;;  %5279 = vmatprep.mubr.bf16.mxu0 %v242_v44  ;;  %v7122_v28 = vld [vmem:[%s9206_s1 + $0xde8] sm:$0xff]   ;;  %v7130_v48 = vld [vmem:[%s9206_s1 + $0xe58] ss:$0 sps:$4 sm:$0xff]  }
 0x1b4   :  { %5136 = vmatmul.mubr.bf16.vlgmr.msra.gmra.mxu1 %v235_v3  ;;  %v7124_v44 = vld [vmem:[%s9206_s1 + $0xe08] sm:$0xff]  }
 0x1b5   :  { %v6304_v4 = vpop.f32.mrf.mxu0  ;;  %6596 = vmatpush3.bf16.msra.mxu1 %v7090_v8  ;;  %5143 = vmatprep.mubr.bf16.mxu1 %v294_v22  ;;  %v7115_v8 = vld [vmem:[%s9206_s1 + $0xe20] sm:$0xff]  }
 0x1b6   :  { %6630 = vmatpush3.bf16.msra.mxu0 %v7087_v61  ;;  %v8931_v58 = vadd.f32 %v6304_v4, %v6303_v6  ;;  %6597 = vmatprep.subr.bf16.mxu1 %v7092_v11  ;;  %v66_v4 = vld [vmem:[%s9207_s0 + $0x198] sm:$0xff]  ;;  %v124_v11 = vld [vmem:[%s9207_s0 + $0x368] sm:$0xff] }
 0x1b7   :  { %6631 = vmatprep.subr.bf16.mxu0 %v7089_v54  ;;  %v6306_v12 = vpop.f32.mrf.mxu0 }
 0x1b9   :  { %v6307_v15 = vpop.f32.mrf.mxu0  ;;  %6598 = vmatpush3.bf16.msra.mxu1 %v7094_v14  ;;  %v240_v14 = vpack.c.bf16 %v124_v11, %v66_v4  ;;  %v127_v11 = vld [vmem:[%s9207_s0 + $0x380] sm:$0xff] }
 0x1ba   :  { %6632 = vmatpush3.bf16.msra.mxu0 %v7091_v9  ;;  %v8945_v1 = vadd.f32 %v6307_v15, %v6306_v12  ;;  %6599 = vmatprep.subr.bf16.mxu1 %v7096_v25  ;;  %v123_v12 = vld [vmem:[%s9207_s0 + $0x360] sm:$0xff]  ;;  %v7116_v15 = vld [vmem:[%s9206_s1 + $0xdf8] sm:$0xff]   ;;  %v181_v25 = vld [vmem:[%s9207_s0 + $0x530] sm:$0xff] }
 0x1bb   :  { %6633 = vmatprep.subr.bf16.mxu0 %v7093_v13 }
 0x1bc   :  { %5144 = vmatmul.mubr.bf16.gmra.mxu1 %v293_v7  ;;  %v7120_v7 = vld [vmem:[%s9206_s1 + $0xdb0] sm:$0xff]  }
 0x1bd   :  { %6600 = vmatpush3.bf16.msra.mxu1 %v7098_v29  ;;  %5231 = vmatprep.mubr.bf16.mxu1 %v240_v14  ;;  %v184_v29 = vld [vmem:[%s9207_s0 + $0x548] sm:$0xff]  ;;  %v186_v14 = vld [vmem:[%s9207_s0 + $0x558] sm:$0xff] }
 0x1be   :  { %6634 = vmatpush3.bf16.msra.mxu0 %v7095_v16  ;;  %6601 = vmatprep.subr.bf16.mxu1 %v7100_v17  ;;  %v7121_v17 = vld [vmem:[%s9206_s1 + $0xe10] sm:$0xff]  }
 0x1bf   :  { %6635 = vmatprep.subr.bf16.mxu0 %v7097_v26 }
 0x1c1   :  { %6602 = vmatpush3.bf16.msra.mxu1 %v7102_v18  ;;  %v297_v18 = vpack.c.bf16 %v181_v25, %v181_v25 }
 0x1c2   :  { %6636 = vmatpush3.bf16.msra.mxu0 %v7099_v31  ;;  %v6275_v34 = vpop.f32.mrf.mxu1  ;;  %6603 = vmatprep.subr.bf16.mxu1 %v7104_v38 }
 0x1c3   :  { %6637 = vmatprep.subr.bf16.mxu0 %v7101_v33  ;;  %v300_v33 = vpack.c.bf16 %v184_v29, %v184_v29 }
 0x1c4   :  { %v6276_v37 = vpop.f32.mrf.mxu1 }
 0x1c5   :  { %v6277_v30 = vadd.f32 %v6276_v37, %v6275_v34  ;;  %6604 = vmatpush3.bf16.msra.mxu1 %v7105_v27  ;;  %v183_v37 = vld [vmem:[%s9207_s0 + $0x540] sm:$0xff] }
 0x1c6   :  { %6638 = vmatpush3.bf16.msra.mxu0 %v7103_v36  ;;  %v6278_v45 = vpop.f32.mrf.mxu1  ;;  %6605 = vmatprep.subr.bf16.mxu1 %v7107_v53  ;;  %v7123_v36 = vld [vmem:[%s9206_s1 + $0xda8] sm:$0xff]   ;;  %v299_v39 = vpack.c.bf16 %v183_v37, %v183_v37  ;;  %v7126_v27 = vld [vmem:[%s9206_s1 + $0xda0] sm:$0xff]  }
 0x1c7   :  { %5343 = vmatprep.subr.bf16.mxu0 %v7152_v46  ;;  %v4658_v32 = vadd.f32 %v6277_v30, %v8860_v35  ;;  %v7108_v35 = vld [vmem:[%s9206_s1 + $0xc90] sm:$0xff]  }
 0x1c8   :  { %v6279_v52 = vpop.f32.mrf.mxu1 }
 0x1c9   :  { %v6280_v40 = vadd.f32 %v6279_v52, %v6278_v45  ;;  %v9010_v55 = vadd.f32 %v8931_v58, %v4658_v32  ;;  %5280 = vmatmul.mubr.bf16.vlgmr.msra.gmra.mxu0 %v241_v50  ;;  %6606 = vmatpush3.bf16.msra.mxu1 %v7108_v35  ;;  %v7128_v45 = vld [vmem:[%s9206_s1 + $0xdd8] sm:$0xff]   ;;  %v7131_v50 = vld [vmem:[%s9206_s1 + $0xdd0] sm:$0xff]   ;;  %v3997_v52 = vsel %vm3995_vm0, %v7130_v48, 0 }
 0x1ca   :  { %5344 = vmatpush1.bf16.msra.mxu0 %v7106_v51  ;;  %v6281_v59 = vpop.f32.mrf.mxu1  ;;  %6607 = vmatprep.subr.bf16.mxu1 %v7110_v41  ;;  %v7129_v32 = vld [vmem:[%s9206_s1 + $0xd98] sm:$0xff]  }
 0x1cb   :  { %v4661_v57 = vadd.f32 %v6280_v40, %v8875_v43  ;;  %5345 = vmatprep.subr.bf16.mxu0 %v7152_v46  ;;  %v6309_v61 = vpop.f32.mrf.mxu0  ;;  %v7112_v43 = vld [vmem:[%s9206_s1 + $0xe28] sm:$0xff]   ;;  %5287 = vmatprep.mubr.bf16.mxu0 %v300_v33  ;;  %v7132_v40 = vld [vmem:[%s9206_s1 + $0xd90] sm:$0xff]  }
 0x1cc   :  { %v6282_v62 = vpop.f32.mrf.mxu1 }
 0x1cd   :  { %v9027_v63 = vadd.f32 %v8945_v1, %v4661_v57  ;;  %v6283_v0 = vadd.f32 %v6282_v62, %v6281_v59  ;;  %v6310_v2 = vpop.f32.mrf.mxu0  ;;  %6608 = vmatpush3.bf16.msra.mxu1 %v7111_v60  ;;  %v7133_v59 = vld [vmem:[%s9206_s1 + $0xe50] sm:$0xff]   ;;  %v70_v60 = vld [vmem:[%s9207_s0 + $0x1b8] sm:$0xff]  ;;  %v72_v62 = vld [vmem:[%s9207_s0 + $0x1c8] sm:$0xff] }
 0x1ce   :  { %5346 = vmatpush1.bf16.msra.mxu0 %v7109_v56  ;;  %v6284_v3 = vpop.f32.mrf.mxu1  ;;  %v6311_v54 = vadd.f32 %v6310_v2, %v6309_v61  ;;  %6609 = vmatprep.subr.bf16.mxu1 %v7113_v49  ;;  %v7134_v56 = vld [vmem:[%s9206_s1 + $0xdc8] sm:$0xff]   ;;  %v130_v49 = vld [vmem:[%s9207_s0 + $0x398] sm:$0xff] }
 0x1cf   :  { %5347 = vmatprep.subr.bf16.mxu0 %v7152_v46  ;;  %v4666_v6 = vadd.f32 %v6283_v0, %v8896_v42  ;;  %v6312_v9 = vpop.f32.mrf.mxu0  ;;  %v65_v42 = vld [vmem:[%s9207_s0 + $0x190] sm:$0xff]  ;;  %v128_v61 = vld [vmem:[%s9207_s0 + $0x388] sm:$0xff] }
 0x1d0   :  { %v6285_v58 = vpop.f32.mrf.mxu1  ;;  %v239_v1 = vpack.c.bf16 %v123_v12, %v65_v42  ;;  %v244_v0 = vpack.c.bf16 %v128_v61, %v70_v60  ;;  %v7138_v9 = vld [vmem:[%s9206_s1 + $0xd80] sm:$0xff]  }
 0x1d1   :  { %v9055_v13 = vadd.f32 %v6311_v54, %v4666_v6  ;;  %v6313_v16 = vpop.f32.mrf.mxu0  ;;  %6610 = vmatpush3.bf16.msra.mxu1 %v7114_v5  ;;  %5288 = vmatmul.mubr.bf16.gmra.mxu0 %v299_v39  ;;  %v7137_v5 = vld [vmem:[%s9206_s1 + $0xdc0] sm:$0xff]   ;;  %v246_v6 = vpack.c.bf16 %v130_v49, %v72_v62  ;;  %v7136_v54 = vld [vmem:[%s9206_s1 + $0xe48] sm:$0xff]   ;;  %v69_v58 = vld [vmem:[%s9207_s0 + $0x1b0] sm:$0xff] }
 0x1d2   :  { %5348 = vmatpush1.bf16.msra.mxu0 %v7112_v43  ;;  %6651 = vmatprep.subr.bf16.mxu1 %v7116_v15  ;;  %v7139_v16 = vld [vmem:[%s9206_s1 + $0xe40] sm:$0xff]  }
 0x1d3   :  { %5349 = vmatprep.subr.bf16.mxu0 %v7152_v46  ;;  %5893 = vmatprep.mubr.msk.bf16.mxu0 %vm3988_vm1, %v246_v6 }
 0x1d4   :  { %5232 = vmatmul.mubr.bf16.vlgmr.msra.gmra.mxu1 %v239_v1  ;;  %v71_v1 = vld [vmem:[%s9207_s0 + $0x1c0] sm:$0xff] }
 0x1d5   :  { %6652 = vmatpush3.bf16.msra.mxu1 %v7117_v19  ;;  %5239 = vmatprep.mubr.bf16.mxu1 %v298_v10  ;;  %v129_v19 = vld [vmem:[%s9207_s0 + $0x390] sm:$0xff] }
 0x1d6   :  { %5350 = vmatpush1.bf16.msra.mxu0 %v7115_v8  ;;  %6653 = vmatprep.subr.bf16.mxu1 %v7119_v20  ;;  %v245_v29 = vpack.c.bf16 %v129_v19, %v71_v1 }
 0x1d7   :  { %5351 = vmatprep.subr.bf16.mxu0 %v7152_v46 }
 0x1d9   :  { %6654 = vmatpush3.bf16.msra.mxu1 %v7120_v7  ;;  %v188_v7 = vld [vmem:[%s9207_s0 + $0x568] sm:$0xff] }
 0x1da   :  { %5352 = vmatpush1.bf16.msra.mxu0 %v7118_v21  ;;  %6655 = vmatprep.subr.bf16.mxu1 %v7122_v28 }
 0x1db   :  { %5353 = vmatprep.subr.bf16.mxu0 %v7152_v46 }
 0x1dc   :  { %5240 = vmatmul.mubr.bf16.gmra.mxu1 %v297_v18 }
 0x1dd   :  { %6656 = vmatpush3.bf16.msra.mxu1 %v7123_v36  ;;  %5327 = vmatprep.mubr.bf16.mxu1 %v244_v0 }
 0x1de   :  { %5354 = vmatpush1.bf16.msra.mxu0 %v7121_v17  ;;  %6657 = vmatprep.subr.bf16.mxu1 %v7125_v23  ;;  %v304_v17 = vpack.c.bf16 %v188_v7, %v188_v7 }
 0x1df   :  { %5355 = vmatprep.subr.bf16.mxu0 %v7152_v46 }
 0x1e1   :  { %6658 = vmatpush3.bf16.msra.mxu1 %v7126_v27 }
 0x1e2   :  { %5356 = vmatpush1.bf16.msra.mxu0 %v7124_v44  ;;  %6659 = vmatprep.subr.bf16.mxu1 %v7128_v45 }
 0x1e3   :  { %5357 = vmatprep.subr.bf16.mxu0 %v7152_v46 }
 0x1e5   :  { %6660 = vmatpush3.bf16.msra.mxu1 %v7129_v32 }
 0x1e6   :  { %5358 = vmatpush1.bf16.msra.mxu0 %v7127_v47  ;;  %6661 = vmatprep.subr.bf16.mxu1 %v7131_v50 }
 0x1e7   :  { %5367 = vmatprep.subr.bf16.mxu0 %v7152_v46 }
 0x1e9   :  { %v6359_v22 = vpop.f32.mrf.mxu0  ;;  %6662 = vmatpush3.bf16.msra.mxu1 %v7132_v40 }
 0x1ea   :  { %5368 = vmatpush2.bf16.msra.mxu0 %v3997_v52  ;;  %6663 = vmatprep.subr.bf16.mxu1 %v7134_v56 }
 0x1eb   :  { %v6360_v26 = vpop.f32.mrf.mxu0  ;;  %5369 = vmatprep.subr.bf16.mxu0 %v7152_v46 }
 0x1ec   :  { %v6361_v31 = vadd.f32 %v6360_v26, %v6359_v22  ;;  %v243_v22 = vpack.c.bf16 %v127_v11, %v69_v58  ;;  %v302_v26 = vpack.c.bf16 %v186_v14, %v186_v14 }
 0x1ed   :  { %v6362_v34 = vpop.f32.mrf.mxu0 }
 0x1ee   :  { %5370 = vmatpush2.bf16.msra.mxu0 %v7133_v59 }
 0x1ef   :  { %v6363_v38 = vpop.f32.mrf.mxu0  ;;  %5371 = vmatprep.subr.bf16.mxu0 %v7152_v46 }
 0x1f0   :  { %v6364_v30 = vadd.f32 %v6363_v38, %v6362_v34 }
 0x1f1   :  { %v6365_v42 = vpop.f32.mrf.mxu0 }
 0x1f2   :  { %5372 = vmatpush2.bf16.msra.mxu0 %v7136_v54 }
 0x1f3   :  { %v6366_v20 = vpop.f32.mrf.mxu0  ;;  %5373 = vmatprep.subr.bf16.mxu0 %v7152_v46  ;;  %v185_v46 = vld [vmem:[%s9207_s0 + $0x550] sm:$0xff] }
 0x1f4   :  { %v6331_v51 = vpop.f32.mrf.mxu1  ;;  %v6367_v25 = vadd.f32 %v6366_v20, %v6365_v42  ;;  %v301_v18 = vpack.c.bf16 %v185_v46, %v185_v46 }
 0x1f5   :  { %v6368_v10 = vpop.f32.mrf.mxu0 }
 0x1f6   :  { %v6332_v53 = vpop.f32.mrf.mxu1  ;;  %5374 = vmatpush2.bf16.msra.mxu0 %v7139_v16 }
 0x1f7   :  { %v6333_v35 = vadd.f32 %v6332_v53, %v6331_v51  ;;  %v6369_v33 = vpop.f32.mrf.mxu0 }
 0x1f8   :  { %v6334_v57 = vpop.f32.mrf.mxu1 }
 0x1f9   :  { %v4754_v41 = vadd.f32 %v6333_v35, %v9010_v55  ;;  %v7135_v55 = vld [vmem:[%s9206_s1 + $0xd88] sm:$0xff]   ;;  %5376 = vmatmul.mubr.bf16.vlgmr.msra.gmra.mxu0 %v245_v29 }
 0x1fa   :  { %v6335_v43 = vpop.f32.mrf.mxu1  ;;  %6664 = vmatpush3.bf16.msra.mxu1 %v7135_v55  ;;  %5894 = vmatprep.mubr.msk.bf16.mxu0 %vm3988_vm1, %v304_v17 }
 0x1fb   :  { %v6336_v2 = vadd.f32 %v6335_v43, %v6334_v57  ;;  %v4802_v3 = vadd.f32 %v6361_v31, %v4754_v41  ;;  %6665 = vmatprep.subr.bf16.mxu1 %v7137_v5 }
 0x1fc   :  { %v6337_v4 = vpop.f32.mrf.mxu1 }
 0x1fd   :  { %v4757_v8 = vadd.f32 %v6336_v2, %v9027_v63 }
 0x1fe   :  { %v6338_v63 = vpop.f32.mrf.mxu1  ;;  %6666 = vmatpush3.bf16.msra.mxu1 %v7138_v9 }
 0x1ff   :  { %v4805_v12 = vadd.f32 %v6364_v30, %v4757_v8  ;;  %v6339_v15 = vadd.f32 %v6338_v63, %v6337_v4 }
 0x200   :  { %v6340_v21 = vpop.f32.mrf.mxu1 }
 0x201   :  { %v4762_v24 = vadd.f32 %v6339_v15, %v9055_v13  ;;  %5328 = vmatmul.mubr.bf16.vlgmr.msra.gmra.mxu1 %v243_v22  ;;  %v187_v13 = vld [vmem:[%s9207_s0 + $0x560] sm:$0xff] }
 0x202   :  { %v6341_v28 = vpop.f32.mrf.mxu1  ;;  %5335 = vmatprep.mubr.bf16.mxu1 %v302_v26  ;;  %v303_v37 = vpack.c.bf16 %v187_v13, %v187_v13 }
 0x203   :  { %v4810_v31 = vadd.f32 %v6367_v25, %v4762_v24 }
 0x204   :  { %5384 = vmatmul.mubr.bf16.gmra.mxu0 %v303_v37 }
 0x209   :  { %v6415_v34 = vpop.f32.mrf.mxu0  ;;  %5336 = vmatmul.mubr.bf16.gmra.mxu1 %v301_v18 }
 0x20b   :  { %v6416_v36 = vpop.f32.mrf.mxu0 }
 0x20c   :  { %v6417_v38 = vadd.f32 %v6416_v36, %v6415_v34 }
 0x20d   :  { %v6418_v39 = vpop.f32.mrf.mxu0 }
 0x20f   :  { %v6419_v23 = vpop.f32.mrf.mxu0 }
 0x210   :  { %v6420_v30 = vadd.f32 %v6419_v23, %v6418_v39 }
 0x211   :  { %v6421_v40 = vpop.f32.mrf.mxu0 }
 0x213   :  { %v6422_v59 = vpop.f32.mrf.mxu0 }
 0x214   :  { %v6387_v44 = vpop.f32.mrf.mxu1  ;;  %v6423_v61 = vadd.f32 %v6422_v59, %v6421_v40 }
 0x215   :  { %v6424_v62 = vpop.f32.mrf.mxu0 }
 0x216   :  { %v6388_v27 = vpop.f32.mrf.mxu1 }
 0x217   :  { %v6389_v45 = vadd.f32 %v6388_v27, %v6387_v44  ;;  %v6425_v0 = vpop.f32.mrf.mxu0 }
 0x218   :  { %v6390_v47 = vpop.f32.mrf.mxu1 }
 0x219   :  { %v4850_v48 = vadd.f32 %v6389_v45, %v4802_v3 }
 0x21a   :  { %v6391_v32 = vpop.f32.mrf.mxu1 }
 0x21b   :  { %v6392_v50 = vadd.f32 %v6391_v32, %v6390_v47  ;;  %v4898_v51 = vadd.f32 %v6417_v38, %v4850_v48 }
 0x21c   :  { %v6393_v53 = vpop.f32.mrf.mxu1 }
 0x21d   :  { %v4853_v52 = vadd.f32 %v6392_v50, %v4805_v12 }
 0x21e   :  { %v6394_v35 = vpop.f32.mrf.mxu1 }
 0x21f   :  { %v4901_v56 = vadd.f32 %v6420_v30, %v4853_v52  ;;  %v6395_v57 = vadd.f32 %v6394_v35, %v6393_v53 }
 0x220   :  { %v6396_v41 = vpop.f32.mrf.mxu1 }
 0x221   :  { %v4858_v60 = vadd.f32 %v6395_v57, %v4810_v31 }
 0x222   :  { %v6397_v43 = vpop.f32.mrf.mxu1 }
 0x223   :  { %v4906_v55 = vadd.f32 %v6423_v61, %v4858_v60 }
 0x229   :  { %v6471_v49 = vpop.f32.mrf.mxu0 }
 0x22b   :  { %v6472_v2 = vpop.f32.mrf.mxu0 }
 0x22c   :  { %v6473_v3 = vadd.f32 %v6472_v2, %v6471_v49 }
 0x22d   :  { %v6474_v5 = vpop.f32.mrf.mxu0 }
 0x22f   :  { %v6475_v6 = vpop.f32.mrf.mxu0 }
 0x230   :  { %v6476_v54 = vadd.f32 %v6475_v6, %v6474_v5 }
 0x231   :  { %v6477_v16 = vpop.f32.mrf.mxu0 }
 0x233   :  { %v6478_v21 = vpop.f32.mrf.mxu0 }
 0x234   :  { %v6443_v8 = vpop.f32.mrf.mxu1  ;;  %v6479_v24 = vadd.f32 %v6478_v21, %v6477_v16 }
 0x235   :  { %v6480_v25 = vpop.f32.mrf.mxu0 }
 0x236   :  { %v6444_v4 = vpop.f32.mrf.mxu1 }
 0x237   :  { %v6445_v9 = vadd.f32 %v6444_v4, %v6443_v8  ;;  %v6481_v28 = vpop.f32.mrf.mxu0 }
 0x238   :  { %v6446_v58 = vpop.f32.mrf.mxu1 }
 0x239   :  { %v4946_v11 = vadd.f32 %v6445_v9, %v4898_v51 }
 0x23a   :  { %v6447_v42 = vpop.f32.mrf.mxu1 }
 0x23b   :  { %v6448_v63 = vadd.f32 %v6447_v42, %v6446_v58  ;;  %v4994_v12 = vadd.f32 %v6473_v3, %v4946_v11 }
 0x23c   :  { %v6449_v15 = vpop.f32.mrf.mxu1 }
 0x23d   :  { %v4949_v14 = vadd.f32 %v6448_v63, %v4901_v56 }
 0x23e   :  { %v6450_v1 = vpop.f32.mrf.mxu1 }
 0x23f   :  { %v4997_v19 = vadd.f32 %v6476_v54, %v4949_v14  ;;  %v6451_v20 = vadd.f32 %v6450_v1, %v6449_v15 }
 0x240   :  { %v6452_v22 = vpop.f32.mrf.mxu1 }
 0x241   :  { %v4954_v7 = vadd.f32 %v6451_v20, %v4906_v55 }
 0x242   :  { %v6453_v26 = vpop.f32.mrf.mxu1 }
 0x243   :  { %v5002_v10 = vadd.f32 %v6479_v24, %v4954_v7 }
 0x249   :  { %v6527_v29 = vpop.f32.mrf.mxu0 }
 0x24b   :  { %v6528_v31 = vpop.f32.mrf.mxu0 }
 0x24c   :  { %v6529_v17 = vadd.f32 %v6528_v31, %v6527_v29 }
 0x24d   :  { %v6530_v33 = vpop.f32.mrf.mxu0 }
 0x24f   :  { %v6531_v46 = vpop.f32.mrf.mxu0 }
 0x250   :  { %v6532_v13 = vadd.f32 %v6531_v46, %v6530_v33 }
 0x251   :  { %v6533_v45 = vpop.f32.mrf.mxu0 }
 0x253   :  { %v6534_v50 = vpop.f32.mrf.mxu0 }
 0x254   :  { %v6499_v34 = vpop.f32.mrf.mxu1  ;;  %v6535_v53 = vadd.f32 %v6534_v50, %v6533_v45 }
 0x255   :  { %v6536_v40 = vpop.f32.mrf.mxu0 }
 0x256   :  { %v6500_v18 = vpop.f32.mrf.mxu1 }
 0x257   :  { %v6501_v36 = vadd.f32 %v6500_v18, %v6499_v34  ;;  %v6537_v57 = vpop.f32.mrf.mxu0 }
 0x258   :  { %v6502_v37 = vpop.f32.mrf.mxu1 }
 0x259   :  { %v5042_v38 = vadd.f32 %v6501_v36, %v4994_v12 }
 0x25a   :  { %v6503_v39 = vpop.f32.mrf.mxu1 }
 0x25b   :  { %v6504_v23 = vadd.f32 %v6503_v39, %v6502_v37  ;;  %v5090_v30 = vadd.f32 %v6529_v17, %v5042_v38 }
 0x25c   :  { %v6505_v27 = vpop.f32.mrf.mxu1 }
 0x25d   :  { %v5045_v44 = vadd.f32 %v6504_v23, %v4997_v19 }
 0x25e   :  { %v6506_v47 = vpop.f32.mrf.mxu1 }
 0x25f   :  { %v5093_v48 = vadd.f32 %v6532_v13, %v5045_v44  ;;  %v6507_v32 = vadd.f32 %v6506_v47, %v6505_v27 }
 0x260   :  { %v6508_v51 = vpop.f32.mrf.mxu1 }
 0x261   :  { %v5050_v52 = vadd.f32 %v6507_v32, %v5002_v10 }
 0x262   :  { %v6509_v35 = vpop.f32.mrf.mxu1 }
 0x263   :  { %v5098_v56 = vadd.f32 %v6535_v53, %v5050_v52 }
 0x269   :  { %v6583_v59 = vpop.f32.mrf.mxu0 }
 0x26b   :  { %v6584_v60 = vpop.f32.mrf.mxu0 }
 0x26c   :  { %v6585_v28 = vadd.f32 %v6584_v60, %v6583_v59 }
 0x26d   :  { %v6586_v43 = vpop.f32.mrf.mxu0 }
 0x26f   :  { %v6587_v0 = vpop.f32.mrf.mxu0 }
 0x270   :  { %v6588_v46 = vadd.f32 %v6587_v0, %v6586_v43 }
 0x271   :  { %v6589_v2 = vpop.f32.mrf.mxu0 }
 0x273   :  { %v6590_v5 = vpop.f32.mrf.mxu0 }
 0x274   :  { %v6555_v41 = vpop.f32.mrf.mxu1  ;;  %v6591_v38 = vadd.f32 %v6590_v5, %v6589_v2 }
 0x275   :  { %v6592_v54 = vpop.f32.mrf.mxu0 }
 0x276   :  { %v6556_v61 = vpop.f32.mrf.mxu1 }
 0x277   :  { %v6593_v4 = vpop.f32.mrf.mxu0  ;;  %v6557_v25 = vadd.f32 %v6556_v61, %v6555_v41 }
 0x278   :  { %v6558_v62 = vpop.f32.mrf.mxu1 }
 0x279   :  { %v5138_v10 = vadd.f32 %v6557_v25, %v5090_v30 }
 0x27a   :  { %v6559_v55 = vpop.f32.mrf.mxu1 }
 0x27b   :  { %v6560_v26 = vadd.f32 %v6559_v55, %v6558_v62  ;;  %v5186_v33 = vadd.f32 %v6585_v28, %v5138_v10 }
 0x27c   :  { %v6561_v49 = vpop.f32.mrf.mxu1 }
 0x27d   :  { %v5141_v31 = vadd.f32 %v6560_v26, %v5093_v48 }
 0x27e   :  { %v6562_v3 = vpop.f32.mrf.mxu1 }
 0x27f   :  { %v6563_v17 = vadd.f32 %v6562_v3, %v6561_v49  ;;  %v5189_v18 = vadd.f32 %v6588_v46, %v5141_v31 }
 0x280   :  { %v6564_v6 = vpop.f32.mrf.mxu1 }
 0x281   :  { %v5146_v37 = vadd.f32 %v6563_v17, %v5098_v56 }
 0x282   :  { %v6565_v8 = vpop.f32.mrf.mxu1 }
 0x283   :  { %v5194_v48 = vadd.f32 %v6591_v38, %v5146_v37 }
 0x289   :  { %v6639_v9 = vpop.f32.mrf.mxu0 }
 0x28b   :  { %v6640_v58 = vpop.f32.mrf.mxu0 }
 0x28c   :  { %v6641_v39 = vadd.f32 %v6640_v58, %v6639_v9 }
 0x28d   :  { %v6642_v63 = vpop.f32.mrf.mxu0 }
 0x28f   :  { %v6643_v15 = vpop.f32.mrf.mxu0 }
 0x290   :  { %v6644_v30 = vadd.f32 %v6643_v15, %v6642_v63 }
 0x291   :  { %v6645_v1 = vpop.f32.mrf.mxu0 }
 0x293   :  { %v6646_v20 = vpop.f32.mrf.mxu0 }
 0x294   :  { %v6611_v11 = vpop.f32.mrf.mxu1  ;;  %v6647_v59 = vadd.f32 %v6646_v20, %v6645_v1 }
 0x295   :  { %v6648_v22 = vpop.f32.mrf.mxu0 }
 0x296   :  { %v6612_v42 = vpop.f32.mrf.mxu1 }
 0x297   :  { %v6649_v24 = vpop.f32.mrf.mxu0  ;;  %v6613_v29 = vadd.f32 %v6612_v42, %v6611_v11 }
 0x298   :  { %v6614_v12 = vpop.f32.mrf.mxu1 }
 0x299   :  { %v5234_v34 = vadd.f32 %v6613_v29, %v5186_v33 }
 0x29a   :  { %v6615_v14 = vpop.f32.mrf.mxu1 }
 0x29b   :  { %v6616_v13 = vadd.f32 %v6615_v14, %v6614_v12  ;;  %v5282_v47 = vadd.f32 %v6641_v39, %v5234_v34 }
 0x29c   :  { %v6617_v16 = vpop.f32.mrf.mxu1 }
 0x29d   :  { %v5237_v23 = vadd.f32 %v6616_v13, %v5189_v18 }
 0x29e   :  { %v6618_v19 = vpop.f32.mrf.mxu1 }
 0x29f   :  { %v6619_v45 = vadd.f32 %v6618_v19, %v6617_v16  ;;  %v5285_v40 = vadd.f32 %v6644_v30, %v5237_v23 }
 0x2a0   :  { %v6620_v21 = vpop.f32.mrf.mxu1 }
 0x2a1   :  { %v5242_v57 = vadd.f32 %v6619_v45, %v5194_v48 }
 0x2a2   :  { %v6621_v7 = vpop.f32.mrf.mxu1 }
 0x2a3   :  { %v5290_v49 = vadd.f32 %v6647_v59, %v5242_v57 }
 0x2b9   :  { %v5377_v44 = vpop.f32.mrf.mxu0 }
 0x2bb   :  { %v5379_v50 = vpop.f32.mrf.mxu0 }
 0x2bd   :  { %v5380_v53 = vpop.f32.mrf.mxu0 }
 0x2bf   :  { %v5382_v60 = vpop.f32.mrf.mxu0 }
 0x2c1   :  { %v6667_v36 = vpop.f32.mrf.mxu1 }
 0x2c3   :  { %v6668_v27 = vpop.f32.mrf.mxu1 }
 0x2c4   :  { %v6669_v32 = vadd.f32 %v6668_v27, %v6667_v36  ;;  %v5385_v55 = vpop.f32.mrf.mxu0 }
 0x2c5   :  { %v6670_v51 = vpop.f32.mrf.mxu1 }
 0x2c6   :  { %v5330_v52 = vadd.f32 %v6669_v32, %v5282_v47  ;;  %v5387_v5 = vpop.f32.mrf.mxu0 }
 0x2c7   :  { %v6671_v35 = vpop.f32.mrf.mxu1 }
 0x2c8   :  { %v6672_v56 = vadd.f32 %v6671_v35, %v6670_v51  ;;  %v5378_v41 = vadd.f32 %v5377_v44, %v5330_v52  ;;  %v5388_v4 = vpop.f32.mrf.mxu0 }
 0x2c9   :  { %v6673_v61 = vpop.f32.mrf.mxu1 }
 0x2ca   :  { %v5333_v62 = vadd.f32 %v6672_v56, %v5285_v40  ;;  %v5392_v43 = vsel %vm5391_vm2, %v5378_v41, 0.0  ;;  %v5389_v11 = vpop.f32.mrf.mxu0  ;;  %v5401_v63 = vmul.f32 2.0, %v5378_v41 }
 0x2cb   :  { %v6674_v0 = vpop.f32.mrf.mxu1  ;;  %5393 = vadd.xlane.f32.xlu0 %v5392_v43 }
 0x2cc   :  { %v6675_v2 = vadd.f32 %v6674_v0, %v6673_v61  ;;  %v5381_v3 = vadd.f32 %v5380_v53, %v5333_v62 }
 0x2cd   :  { %v6676_v6 = vpop.f32.mrf.mxu1 }
 0x2ce   :  { %v5338_v54 = vadd.f32 %v6675_v2, %v5290_v49  ;;  %v5395_v8 = vsel %vm5391_vm2, %v5381_v3, 0.0  ;;  %v5402_v16 = vmul.f32 2.0, %v5381_v3 }
 0x2cf   :  { %v6677_v9 = vpop.f32.mrf.mxu1  ;;  %5396 = vadd.xlane.f32.xlu0 %v5395_v8 }
 0x2d0   :  { %v5386_v58 = vadd.f32 %v5385_v55, %v5338_v54 }
 0x2d2   :  { %v5398_v42 = vsel %vm5391_vm2, %v5386_v58, 0.0  ;;  %v5403_v22 = vmul.f32 2.0, %v5386_v58 }
 0x2d3   :  { %5399 = vadd.xlane.f32.xlu1 %v5398_v42 }
 0x354   :  { %v5394_v12 = vpop.xlane.xlu0 %5393 }
 0x355   :  { %v5404_v14 = vsub.f32 %v5401_v63, %v5394_v12 }
 0x357   :  { %v5407_v15 = vsub.f32 0.0, %v5404_v14 }
 0x358   :  { %v5397_v1 = vpop.xlane.xlu0 %5396 }
 0x359   :  { %v5410_v19 = vmul.f32 1.442695, %v5407_v15  ;;  %v5405_v20 = vsub.f32 %v5402_v16, %v5397_v1 }
 0x35b   :  { %7140 = vpow2.f32 %v5410_v19  ;;  %v5408_v21 = vsub.f32 0.0, %v5405_v20 }
 0x35c   :  { %v5400_v7 = vpop.xlane.xlu1 %5399 }
 0x35d   :  { %v5412_v24 = vmul.f32 1.442695, %v5408_v21  ;;  %v5406_v25 = vsub.f32 %v5403_v22, %v5400_v7 }
 0x35f   :  { %7142 = vpow2.f32 %v5412_v24  ;;  %v5409_v26 = vsub.f32 0.0, %v5406_v25 }
 0x361   :  { %v5414_v10 = vmul.f32 1.442695, %v5409_v26 }
 0x363   :  { %7144 = vpow2.f32 %v5414_v10 }
 0x368   :  { %v7141_v28 = vpop.eup %7140 }
 0x369   :  { %v5416_v29 = vadd.f32 1.0, %v7141_v28 }
 0x36b   :  { %7146 = vrcp.f32 %v5416_v29 }
 0x36c   :  { %v7143_v31 = vpop.eup %7142 }
 0x36d   :  { %v5417_v17 = vadd.f32 1.0, %v7143_v31 }
 0x36f   :  { %7148 = vrcp.f32 %v5417_v17 }
 0x370   :  { %v7145_v33 = vpop.eup %7144 }
 0x371   :  { %v5418_v46 = vadd.f32 1.0, %v7145_v33 }
 0x373   :  { %7150 = vrcp.f32 %v5418_v46 }
 0x378   :  { %v7147_v13 = vpop.eup %7146 }
 0x379   :  { %5425 = vst.msk [vmem:[%s9209_s3] sm:$0xff] %vm5391_vm2, %v7147_v13 }
 0x37c   :  { %v7149_v34 = vpop.eup %7148 }
 0x37d   :  { %5426 = vst.msk [vmem:[%s9209_s3 + $0x8] sm:$0xff] %vm5391_vm2, %v7149_v34 }
 0x380   :  { %v7151_v18 = vpop.eup %7150 }
 0x381   :  { %5427 = vst.msk [vmem:[%s9209_s3 + $0x10] sm:$0xff] %vm5391_vm2, %v7151_v18 }

</bundles_post_ra>
